<compile_context>
chip_gen: v5e
topology: v5e:2x2
jax: 0.10.0
libtpu: 0.0.40
codegen_flags: <defaults>
</compile_context>

<pallas_src>
import jax
import jax.numpy as jnp
from jax.experimental import pallas as pl
from jax.experimental.pallas import tpu as pltpu


# --------------------------------- kernel -----------------------------------
def _pu_kernel(xo_ref, xe_ref, rcat_ref,
               p_band_ref, p_dwb_ref, p_pww_ref, p_pwb_ref,
               u_band_ref, u_dwb_ref, u_pww_ref, u_pwb_ref,
               s_ref, d_ref):
    """Fused PU forward for one batch element.

    xo_ref, xe_ref : (1, C, H, W) VMEM blocks (NCHW, one batch element)
    rcat_ref       : (5H, H)      VMEM  stacked zero-padded row-shift matrices
    *_band_ref     : (C, 5, W, W) VMEM  per-channel banded column-shift*weight mats
    *_dwb_ref      : (C,)         SMEM  depthwise bias
    *_pww_ref      : (C, C)       SMEM  1x1 conv weights (C_in, C_out)
    *_pwb_ref      : (C,)         SMEM  1x1 conv bias
    s_ref, d_ref   : (1, C, H, W) VMEM outputs  (s = xe + u(d),  d = xo - p(xe))
    """
    _, C, H, W = xo_ref.shape

    rcat = rcat_ref[...]                      # (5H, H), shared by both branches

    def lifting_branch(xs, band_ref, dwb_ref, pww_ref, pwb_ref):
        # xs: list of C per-channel (H, W) f32 values.
        relu = []
        for c in range(C):
            # Depthwise 5x5 conv (pad=2) as banded matmuls; zero padding is
            # implicit in rcat / band, so no padded scratch and no unaligned slices.
            ycat = jnp.dot(rcat, xs[c], preferred_element_type=jnp.float32)   # (5H, W)
            acc = jnp.dot(ycat[0:H, :], band_ref[c, 0],
                          preferred_element_type=jnp.float32)
            for dy in range(1, 5):
                acc = acc + jnp.dot(ycat[dy * H:(dy + 1) * H, :], band_ref[c, dy],
                                    preferred_element_type=jnp.float32)
            relu.append(jnp.maximum(acc + dwb_ref[c], 0.0))                   # bias + ReLU
        # 1x1 conv across channels on the VPU (C is tiny), Tanh on the EUP.
        outs = []
        for co in range(C):
            o = relu[0] * pww_ref[0, co]
            for ci in range(1, C):
                o = o + relu[ci] * pww_ref[ci, co]
            outs.append(jnp.tanh(o + pwb_ref[co]))
        return outs

    xe = [xe_ref[0, c] for c in range(C)]
    xo = [xo_ref[0, c] for c in range(C)]

    p = lifting_branch(xe, p_band_ref, p_dwb_ref, p_pww_ref, p_pwb_ref)   # p = P(xe)
    d = [xo[c] - p[c] for c in range(C)]                                  # d = xo - p
    u = lifting_branch(d, u_band_ref, u_dwb_ref, u_pww_ref, u_pwb_ref)    # u = U(d)

    for c in range(C):
        d_ref[0, c] = d[c]
        s_ref[0, c] = xe[c] + u[c]                                        # s = xe + u(d)


# ------------------------- wrapper-side weight plumbing ----------------------
def _row_shift_matrices(H):
    """(5H, H): block dy selects rows i + dy - 2 of x with zero padding."""
    return jnp.concatenate(
        [jnp.eye(H, dtype=jnp.float32, k=dy - 2) for dy in range(5)], axis=0)


def _band_matrices(dw_w, W):
    """Fold the 5x5 depthwise weights into banded (W, W) matrices.

    dw_w: (C, 5, 5)  (torch Conv2d(C, C, 5, groups=C) weight (C, 1, 5, 5) squeezed)
    returns (C, 5, W, W) with band[c, dy][j + dx - 2, j] = dw_w[c, dy, dx], so a
    right-multiply applies the column shift, the tap weight and the W-border zero
    padding in a single MXU pass.
    """
    shift = jnp.stack([jnp.eye(W, dtype=jnp.float32, k=2 - dx) for dx in range(5)])  # (5, W, W)
    return jnp.einsum("cyx,xkj->cykj", dw_w.astype(jnp.float32), shift)


def init_pu_params(key, channels):
    """Deterministic synthetic params. Shapes mirror the torch module:
    depthwise Conv2d(C, C, 5, groups=C)  weight (C,1,5,5) -> stored (C,5,5)
    pointwise Conv2d(C, C, 1)            weight (C,C,1,1) -> stored (C_in, C_out)
    """
    def branch(k):
        k1, k2, k3, k4 = jax.random.split(k, 4)
        return dict(
            dw_w=0.1 * jax.random.normal(k1, (channels, 5, 5), jnp.float32),
            dw_b=0.1 * jax.random.normal(k2, (channels,), jnp.float32),
            pw_w=0.1 * jax.random.normal(k3, (channels, channels), jnp.float32),
            pw_b=0.1 * jax.random.normal(k4, (channels,), jnp.float32),
        )
    kp, ku = jax.random.split(key)
    return dict(p=branch(kp), u=branch(ku))


@jax.jit
def pu_forward(xo, xe, params):
    """PU.forward with return_loss=False: returns (s, d), both NCHW like torch."""
    B, C, H, W = xo.shape
    pp, up = params["p"], params["u"]

    # Tiny weight preprocessing (a few KiB); fused by XLA ahead of the kernel.
    rcat = _row_shift_matrices(H)                  # (5H, H)
    p_band = _band_matrices(pp["dw_w"], W)         # (C, 5, W, W)
    u_band = _band_matrices(up["dw_w"], W)

    img_spec = pl.BlockSpec((1, C, H, W), lambda b: (b, 0, 0, 0))
    rcat_spec = pl.BlockSpec((5 * H, H), lambda b: (0, 0))
    band_spec = pl.BlockSpec((C, 5, W, W), lambda b: (0, 0, 0, 0))
    smem_spec = pl.BlockSpec(memory_space=pltpu.MemorySpace.SMEM)

    s, d = pl.pallas_call(
        _pu_kernel,
        out_shape=(jax.ShapeDtypeStruct((B, C, H, W), xo.dtype),
                   jax.ShapeDtypeStruct((B, C, H, W), xo.dtype)),
        grid=(B,),
        in_specs=[img_spec, img_spec, rcat_spec,
                  band_spec, smem_spec, smem_spec, smem_spec,
                  band_spec, smem_spec, smem_spec, smem_spec],
        out_specs=(img_spec, img_spec),
        compiler_params=pltpu.CompilerParams(
            # "parallel" batch axis -> both TensorCores on v7x; harmless elsewhere.
            dimension_semantics=("parallel",),
            # Blocks here are tiny; raise further (and H-tile with a 4-row halo)
            # for large images per the per-generation VMEM budgets.
            vmem_limit_bytes=32 * 1024 * 1024,
        ),
    )(xo, xe, rcat,
      p_band, pp["dw_b"], pp["pw_w"], pp["pw_b"],
      u_band, up["dw_b"], up["pw_w"], up["pw_b"])
    return s, d
    # TODO(synk): return_loss=True path (MSELoss-weighted auxiliary loss) not
    # implemented; the default module path (return_loss=False) is reproduced.


# ---------------- pure-JAX reference (for correctness check) -----------------
def _ref_branch(x, prm):
    C = x.shape[1]
    w = prm["dw_w"].reshape(C, 1, 5, 5)            # OIHW, I = in/groups = 1
    y = jax.lax.conv_general_dilated(
        x, w, window_strides=(1, 1), padding=((2, 2), (2, 2)),
        dimension_numbers=("NCHW", "OIHW", "NCHW"), feature_group_count=C)
    y = jnp.maximum(y + prm["dw_b"].reshape(1, C, 1, 1), 0.0)
    y = jnp.einsum("bihw,io->bohw", y, prm["pw_w"]) + prm["pw_b"].reshape(1, C, 1, 1)
    return jnp.tanh(y)


def _ref_forward(xo, xe, params):
    p = _ref_branch(xe, params["p"])
    d = xo - p
    s = xe + _ref_branch(d, params["u"])
    return s, d


if __name__ == "__main__":
    B, C, H, W = 2, 4, 16, 16
    key = jax.random.PRNGKey(0)
    k_xo, k_xe, k_prm = jax.random.split(key, 3)
    xo = jax.random.normal(k_xo, (B, C, H, W), jnp.float32)
    xe = jax.random.normal(k_xe, (B, C, H, W), jnp.float32)
    params = init_pu_params(k_prm, C)

    s, d = pu_forward(xo, xe, params)
    jax.block_until_ready((s, d))

    s_ref, d_ref = _ref_forward(xo, xe, params)
    assert s.shape == (B, C, H, W) and d.shape == (B, C, H, W)
    assert jnp.allclose(d, d_ref, atol=1e-4, rtol=1e-4), \
        f"d mismatch, max abs err = {float(jnp.max(jnp.abs(d - d_ref)))}"
    assert jnp.allclose(s, s_ref, atol=1e-4, rtol=1e-4), \
        f"s mismatch, max abs err = {float(jnp.max(jnp.abs(s - s_ref)))}"

    print("KERNEL_OK")
</pallas_src>

<mosaic_0001>
module attributes {stable_mosaic.version = 11 : i64} {
  func.func @_pu_kernel(%arg0: i32, %arg1: memref<1x4x16x16xf32, #tpu.memory_space<vmem>>, %arg2: memref<1x4x16x16xf32, #tpu.memory_space<vmem>>, %arg3: memref<80x16xf32, #tpu.memory_space<vmem>>, %arg4: memref<4x5x16x16xf32, #tpu.memory_space<vmem>>, %arg5: memref<4xf32, #tpu.memory_space<smem>>, %arg6: memref<4x4xf32, #tpu.memory_space<smem>>, %arg7: memref<4xf32, #tpu.memory_space<smem>>, %arg8: memref<4x5x16x16xf32, #tpu.memory_space<vmem>>, %arg9: memref<4xf32, #tpu.memory_space<smem>>, %arg10: memref<4x4xf32, #tpu.memory_space<smem>>, %arg11: memref<4xf32, #tpu.memory_space<smem>>, %arg12: memref<1x4x16x16xf32, #tpu.memory_space<vmem>>, %arg13: memref<1x4x16x16xf32, #tpu.memory_space<vmem>>) attributes {dimension_semantics = [#tpu.dimension_semantics<parallel>], iteration_bounds = array<i64: 2>, scalar_prefetch = 0 : i64, scratch_operands = 0 : i64, tpu.core_type = #tpu.core_type<tc>, window_params = [{transform_indices = @transform_0, window_bounds = array<i64: 1, 4, 16, 16>}, {transform_indices = @transform_1, window_bounds = array<i64: 1, 4, 16, 16>}, {pipeline_mode = #tpu.pipeline_mode<synchronous>, transform_indices = @transform_2, window_bounds = array<i64: 80, 16>}, {pipeline_mode = #tpu.pipeline_mode<synchronous>, transform_indices = @transform_3, window_bounds = array<i64: 4, 5, 16, 16>}, {transform_indices = @transform_4, window_bounds = array<i64: 4>}, {transform_indices = @transform_5, window_bounds = array<i64: 4, 4>}, {transform_indices = @transform_6, window_bounds = array<i64: 4>}, {pipeline_mode = #tpu.pipeline_mode<synchronous>, transform_indices = @transform_7, window_bounds = array<i64: 4, 5, 16, 16>}, {transform_indices = @transform_8, window_bounds = array<i64: 4>}, {transform_indices = @transform_9, window_bounds = array<i64: 4, 4>}, {transform_indices = @transform_10, window_bounds = array<i64: 4>}, {transform_indices = @transform_11, window_bounds = array<i64: 1, 4, 16, 16>}, {transform_indices = @transform_12, window_bounds = array<i64: 1, 4, 16, 16>}]} {
    %c0 = arith.constant 0 : index
    %c0_0 = arith.constant 0 : index
    %0 = vector.load %arg3[%c0, %c0_0] : memref<80x16xf32, #tpu.memory_space<vmem>>, vector<80x16xf32>
    %c0_1 = arith.constant 0 : index
    %c0_2 = arith.constant 0 : index
    %c0_3 = arith.constant 0 : index
    %c0_4 = arith.constant 0 : index
    %1 = vector.load %arg2[%c0_1, %c0_2, %c0_3, %c0_4] : memref<1x4x16x16xf32, #tpu.memory_space<vmem>>, vector<1x1x16x16xf32>
    %2 = vector.shape_cast %1 : vector<1x1x16x16xf32> to vector<16x16xf32>
    %c0_5 = arith.constant 0 : index
    %c1 = arith.constant 1 : index
    %c0_6 = arith.constant 0 : index
    %c0_7 = arith.constant 0 : index
    %3 = vector.load %arg2[%c0_5, %c1, %c0_6, %c0_7] : memref<1x4x16x16xf32, #tpu.memory_space<vmem>>, vector<1x1x16x16xf32>
    %4 = vector.shape_cast %3 : vector<1x1x16x16xf32> to vector<16x16xf32>
    %c0_8 = arith.constant 0 : index
    %c2 = arith.constant 2 : index
    %c0_9 = arith.constant 0 : index
    %c0_10 = arith.constant 0 : index
    %5 = vector.load %arg2[%c0_8, %c2, %c0_9, %c0_10] : memref<1x4x16x16xf32, #tpu.memory_space<vmem>>, vector<1x1x16x16xf32>
    %6 = vector.shape_cast %5 : vector<1x1x16x16xf32> to vector<16x16xf32>
    %c0_11 = arith.constant 0 : index
    %c3 = arith.constant 3 : index
    %c0_12 = arith.constant 0 : index
    %c0_13 = arith.constant 0 : index
    %7 = vector.load %arg2[%c0_11, %c3, %c0_12, %c0_13] : memref<1x4x16x16xf32, #tpu.memory_space<vmem>>, vector<1x1x16x16xf32>
    %8 = vector.shape_cast %7 : vector<1x1x16x16xf32> to vector<16x16xf32>
    %c0_14 = arith.constant 0 : index
    %c0_15 = arith.constant 0 : index
    %c0_16 = arith.constant 0 : index
    %c0_17 = arith.constant 0 : index
    %9 = vector.load %arg1[%c0_14, %c0_15, %c0_16, %c0_17] : memref<1x4x16x16xf32, #tpu.memory_space<vmem>>, vector<1x1x16x16xf32>
    %10 = vector.shape_cast %9 : vector<1x1x16x16xf32> to vector<16x16xf32>
    %c0_18 = arith.constant 0 : index
    %c1_19 = arith.constant 1 : index
    %c0_20 = arith.constant 0 : index
    %c0_21 = arith.constant 0 : index
    %11 = vector.load %arg1[%c0_18, %c1_19, %c0_20, %c0_21] : memref<1x4x16x16xf32, #tpu.memory_space<vmem>>, vector<1x1x16x16xf32>
    %12 = vector.shape_cast %11 : vector<1x1x16x16xf32> to vector<16x16xf32>
    %c0_22 = arith.constant 0 : index
    %c2_23 = arith.constant 2 : index
    %c0_24 = arith.constant 0 : index
    %c0_25 = arith.constant 0 : index
    %13 = vector.load %arg1[%c0_22, %c2_23, %c0_24, %c0_25] : memref<1x4x16x16xf32, #tpu.memory_space<vmem>>, vector<1x1x16x16xf32>
    %14 = vector.shape_cast %13 : vector<1x1x16x16xf32> to vector<16x16xf32>
    %c0_26 = arith.constant 0 : index
    %c3_27 = arith.constant 3 : index
    %c0_28 = arith.constant 0 : index
    %c0_29 = arith.constant 0 : index
    %15 = vector.load %arg1[%c0_26, %c3_27, %c0_28, %c0_29] : memref<1x4x16x16xf32, #tpu.memory_space<vmem>>, vector<1x1x16x16xf32>
    %16 = vector.shape_cast %15 : vector<1x1x16x16xf32> to vector<16x16xf32>
    %cst = arith.constant dense<0.000000e+00> : vector<80x16xf32>
    %17 = tpu.matmul %0, %2, %cst {dimension_numbers = #tpu.dot_dimension_numbers<[1], [0], [0], [1], [0, 0, 1, 1], [], []>} : vector<80x16xf32>, vector<16x16xf32>, vector<80x16xf32> -> vector<80x16xf32>
    %18 = vector.extract_strided_slice %17 {offsets = [0, 0], sizes = [16, 16], strides = [1, 1]} : vector<80x16xf32> to vector<16x16xf32>
    %c0_30 = arith.constant 0 : index
    %c0_31 = arith.constant 0 : index
    %c0_32 = arith.constant 0 : index
    %c0_33 = arith.constant 0 : index
    %19 = vector.load %arg4[%c0_30, %c0_31, %c0_32, %c0_33] : memref<4x5x16x16xf32, #tpu.memory_space<vmem>>, vector<1x1x16x16xf32>
    %20 = vector.shape_cast %19 : vector<1x1x16x16xf32> to vector<16x16xf32>
    %cst_34 = arith.constant dense<0.000000e+00> : vector<16x16xf32>
    %21 = tpu.matmul %18, %20, %cst_34 {dimension_numbers = #tpu.dot_dimension_numbers<[1], [0], [0], [1], [0, 0, 1, 1], [], []>} : vector<16x16xf32>, vector<16x16xf32>, vector<16x16xf32> -> vector<16x16xf32>
    %22 = vector.extract_strided_slice %17 {offsets = [16, 0], sizes = [16, 16], strides = [1, 1]} : vector<80x16xf32> to vector<16x16xf32>
    %c0_35 = arith.constant 0 : index
    %c1_36 = arith.constant 1 : index
    %c0_37 = arith.constant 0 : index
    %c0_38 = arith.constant 0 : index
    %23 = vector.load %arg4[%c0_35, %c1_36, %c0_37, %c0_38] : memref<4x5x16x16xf32, #tpu.memory_space<vmem>>, vector<1x1x16x16xf32>
    %24 = vector.shape_cast %23 : vector<1x1x16x16xf32> to vector<16x16xf32>
    %cst_39 = arith.constant dense<0.000000e+00> : vector<16x16xf32>
    %25 = tpu.matmul %22, %24, %cst_39 {dimension_numbers = #tpu.dot_dimension_numbers<[1], [0], [0], [1], [0, 0, 1, 1], [], []>} : vector<16x16xf32>, vector<16x16xf32>, vector<16x16xf32> -> vector<16x16xf32>
    %26 = arith.addf %21, %25 : vector<16x16xf32>
    %27 = vector.extract_strided_slice %17 {offsets = [32, 0], sizes = [16, 16], strides = [1, 1]} : vector<80x16xf32> to vector<16x16xf32>
    %c0_40 = arith.constant 0 : index
    %c2_41 = arith.constant 2 : index
    %c0_42 = arith.constant 0 : index
    %c0_43 = arith.constant 0 : index
    %28 = vector.load %arg4[%c0_40, %c2_41, %c0_42, %c0_43] : memref<4x5x16x16xf32, #tpu.memory_space<vmem>>, vector<1x1x16x16xf32>
    %29 = vector.shape_cast %28 : vector<1x1x16x16xf32> to vector<16x16xf32>
    %cst_44 = arith.constant dense<0.000000e+00> : vector<16x16xf32>
    %30 = tpu.matmul %27, %29, %cst_44 {dimension_numbers = #tpu.dot_dimension_numbers<[1], [0], [0], [1], [0, 0, 1, 1], [], []>} : vector<16x16xf32>, vector<16x16xf32>, vector<16x16xf32> -> vector<16x16xf32>
    %31 = arith.addf %26, %30 : vector<16x16xf32>
    %32 = vector.extract_strided_slice %17 {offsets = [48, 0], sizes = [16, 16], strides = [1, 1]} : vector<80x16xf32> to vector<16x16xf32>
    %c0_45 = arith.constant 0 : index
    %c3_46 = arith.constant 3 : index
    %c0_47 = arith.constant 0 : index
    %c0_48 = arith.constant 0 : index
    %33 = vector.load %arg4[%c0_45, %c3_46, %c0_47, %c0_48] : memref<4x5x16x16xf32, #tpu.memory_space<vmem>>, vector<1x1x16x16xf32>
    %34 = vector.shape_cast %33 : vector<1x1x16x16xf32> to vector<16x16xf32>
    %cst_49 = arith.constant dense<0.000000e+00> : vector<16x16xf32>
    %35 = tpu.matmul %32, %34, %cst_49 {dimension_numbers = #tpu.dot_dimension_numbers<[1], [0], [0], [1], [0, 0, 1, 1], [], []>} : vector<16x16xf32>, vector<16x16xf32>, vector<16x16xf32> -> vector<16x16xf32>
    %36 = arith.addf %31, %35 : vector<16x16xf32>
    %37 = vector.extract_strided_slice %17 {offsets = [64, 0], sizes = [16, 16], strides = [1, 1]} : vector<80x16xf32> to vector<16x16xf32>
    %c0_50 = arith.constant 0 : index
    %c4 = arith.constant 4 : index
    %c0_51 = arith.constant 0 : index
    %c0_52 = arith.constant 0 : index
    %38 = vector.load %arg4[%c0_50, %c4, %c0_51, %c0_52] : memref<4x5x16x16xf32, #tpu.memory_space<vmem>>, vector<1x1x16x16xf32>
    %39 = vector.shape_cast %38 : vector<1x1x16x16xf32> to vector<16x16xf32>
    %cst_53 = arith.constant dense<0.000000e+00> : vector<16x16xf32>
    %40 = tpu.matmul %37, %39, %cst_53 {dimension_numbers = #tpu.dot_dimension_numbers<[1], [0], [0], [1], [0, 0, 1, 1], [], []>} : vector<16x16xf32>, vector<16x16xf32>, vector<16x16xf32> -> vector<16x16xf32>
    %41 = arith.addf %36, %40 : vector<16x16xf32>
    %c0_54 = arith.constant 0 : index
    %42 = memref.load %arg5[%c0_54] : memref<4xf32, #tpu.memory_space<smem>>
    %43 = vector.broadcast %42 : f32 to vector<16x16xf32>
    %44 = arith.addf %41, %43 : vector<16x16xf32>
    %cst_55 = arith.constant 0.000000e+00 : f32
    %45 = vector.broadcast %cst_55 : f32 to vector<16x16xf32>
    %46 = arith.maximumf %44, %45 : vector<16x16xf32>
    %cst_56 = arith.constant dense<0.000000e+00> : vector<80x16xf32>
    %47 = tpu.matmul %0, %4, %cst_56 {dimension_numbers = #tpu.dot_dimension_numbers<[1], [0], [0], [1], [0, 0, 1, 1], [], []>} : vector<80x16xf32>, vector<16x16xf32>, vector<80x16xf32> -> vector<80x16xf32>
    %48 = vector.extract_strided_slice %47 {offsets = [0, 0], sizes = [16, 16], strides = [1, 1]} : vector<80x16xf32> to vector<16x16xf32>
    %c1_57 = arith.constant 1 : index
    %c0_58 = arith.constant 0 : index
    %c0_59 = arith.constant 0 : index
    %c0_60 = arith.constant 0 : index
    %49 = vector.load %arg4[%c1_57, %c0_58, %c0_59, %c0_60] : memref<4x5x16x16xf32, #tpu.memory_space<vmem>>, vector<1x1x16x16xf32>
    %50 = vector.shape_cast %49 : vector<1x1x16x16xf32> to vector<16x16xf32>
    %cst_61 = arith.constant dense<0.000000e+00> : vector<16x16xf32>
    %51 = tpu.matmul %48, %50, %cst_61 {dimension_numbers = #tpu.dot_dimension_numbers<[1], [0], [0], [1], [0, 0, 1, 1], [], []>} : vector<16x16xf32>, vector<16x16xf32>, vector<16x16xf32> -> vector<16x16xf32>
    %52 = vector.extract_strided_slice %47 {offsets = [16, 0], sizes = [16, 16], strides = [1, 1]} : vector<80x16xf32> to vector<16x16xf32>
    %c1_62 = arith.constant 1 : index
    %c1_63 = arith.constant 1 : index
    %c0_64 = arith.constant 0 : index
    %c0_65 = arith.constant 0 : index
    %53 = vector.load %arg4[%c1_62, %c1_63, %c0_64, %c0_65] : memref<4x5x16x16xf32, #tpu.memory_space<vmem>>, vector<1x1x16x16xf32>
    %54 = vector.shape_cast %53 : vector<1x1x16x16xf32> to vector<16x16xf32>
    %cst_66 = arith.constant dense<0.000000e+00> : vector<16x16xf32>
    %55 = tpu.matmul %52, %54, %cst_66 {dimension_numbers = #tpu.dot_dimension_numbers<[1], [0], [0], [1], [0, 0, 1, 1], [], []>} : vector<16x16xf32>, vector<16x16xf32>, vector<16x16xf32> -> vector<16x16xf32>
    %56 = arith.addf %51, %55 : vector<16x16xf32>
    %57 = vector.extract_strided_slice %47 {offsets = [32, 0], sizes = [16, 16], strides = [1, 1]} : vector<80x16xf32> to vector<16x16xf32>
    %c1_67 = arith.constant 1 : index
    %c2_68 = arith.constant 2 : index
    %c0_69 = arith.constant 0 : index
    %c0_70 = arith.constant 0 : index
    %58 = vector.load %arg4[%c1_67, %c2_68, %c0_69, %c0_70] : memref<4x5x16x16xf32, #tpu.memory_space<vmem>>, vector<1x1x16x16xf32>
    %59 = vector.shape_cast %58 : vector<1x1x16x16xf32> to vector<16x16xf32>
    %cst_71 = arith.constant dense<0.000000e+00> : vector<16x16xf32>
    %60 = tpu.matmul %57, %59, %cst_71 {dimension_numbers = #tpu.dot_dimension_numbers<[1], [0], [0], [1], [0, 0, 1, 1], [], []>} : vector<16x16xf32>, vector<16x16xf32>, vector<16x16xf32> -> vector<16x16xf32>
    %61 = arith.addf %56, %60 : vector<16x16xf32>
    %62 = vector.extract_strided_slice %47 {offsets = [48, 0], sizes = [16, 16], strides = [1, 1]} : vector<80x16xf32> to vector<16x16xf32>
    %c1_72 = arith.constant 1 : index
    %c3_73 = arith.constant 3 : index
    %c0_74 = arith.constant 0 : index
    %c0_75 = arith.constant 0 : index
    %63 = vector.load %arg4[%c1_72, %c3_73, %c0_74, %c0_75] : memref<4x5x16x16xf32, #tpu.memory_space<vmem>>, vector<1x1x16x16xf32>
    %64 = vector.shape_cast %63 : vector<1x1x16x16xf32> to vector<16x16xf32>
    %cst_76 = arith.constant dense<0.000000e+00> : vector<16x16xf32>
    %65 = tpu.matmul %62, %64, %cst_76 {dimension_numbers = #tpu.dot_dimension_numbers<[1], [0], [0], [1], [0, 0, 1, 1], [], []>} : vector<16x16xf32>, vector<16x16xf32>, vector<16x16xf32> -> vector<16x16xf32>
    %66 = arith.addf %61, %65 : vector<16x16xf32>
    %67 = vector.extract_strided_slice %47 {offsets = [64, 0], sizes = [16, 16], strides = [1, 1]} : vector<80x16xf32> to vector<16x16xf32>
    %c1_77 = arith.constant 1 : index
    %c4_78 = arith.constant 4 : index
    %c0_79 = arith.constant 0 : index
    %c0_80 = arith.constant 0 : index
    %68 = vector.load %arg4[%c1_77, %c4_78, %c0_79, %c0_80] : memref<4x5x16x16xf32, #tpu.memory_space<vmem>>, vector<1x1x16x16xf32>
    %69 = vector.shape_cast %68 : vector<1x1x16x16xf32> to vector<16x16xf32>
    %cst_81 = arith.constant dense<0.000000e+00> : vector<16x16xf32>
    %70 = tpu.matmul %67, %69, %cst_81 {dimension_numbers = #tpu.dot_dimension_numbers<[1], [0], [0], [1], [0, 0, 1, 1], [], []>} : vector<16x16xf32>, vector<16x16xf32>, vector<16x16xf32> -> vector<16x16xf32>
    %71 = arith.addf %66, %70 : vector<16x16xf32>
    %c1_82 = arith.constant 1 : index
    %72 = memref.load %arg5[%c1_82] : memref<4xf32, #tpu.memory_space<smem>>
    %73 = vector.broadcast %72 : f32 to vector<16x16xf32>
    %74 = arith.addf %71, %73 : vector<16x16xf32>
    %cst_83 = arith.constant 0.000000e+00 : f32
    %75 = vector.broadcast %cst_83 : f32 to vector<16x16xf32>
    %76 = arith.maximumf %74, %75 : vector<16x16xf32>
    %cst_84 = arith.constant dense<0.000000e+00> : vector<80x16xf32>
    %77 = tpu.matmul %0, %6, %cst_84 {dimension_numbers = #tpu.dot_dimension_numbers<[1], [0], [0], [1], [0, 0, 1, 1], [], []>} : vector<80x16xf32>, vector<16x16xf32>, vector<80x16xf32> -> vector<80x16xf32>
    %78 = vector.extract_strided_slice %77 {offsets = [0, 0], sizes = [16, 16], strides = [1, 1]} : vector<80x16xf32> to vector<16x16xf32>
    %c2_85 = arith.constant 2 : index
    %c0_86 = arith.constant 0 : index
    %c0_87 = arith.constant 0 : index
    %c0_88 = arith.constant 0 : index
    %79 = vector.load %arg4[%c2_85, %c0_86, %c0_87, %c0_88] : memref<4x5x16x16xf32, #tpu.memory_space<vmem>>, vector<1x1x16x16xf32>
    %80 = vector.shape_cast %79 : vector<1x1x16x16xf32> to vector<16x16xf32>
    %cst_89 = arith.constant dense<0.000000e+00> : vector<16x16xf32>
    %81 = tpu.matmul %78, %80, %cst_89 {dimension_numbers = #tpu.dot_dimension_numbers<[1], [0], [0], [1], [0, 0, 1, 1], [], []>} : vector<16x16xf32>, vector<16x16xf32>, vector<16x16xf32> -> vector<16x16xf32>
    %82 = vector.extract_strided_slice %77 {offsets = [16, 0], sizes = [16, 16], strides = [1, 1]} : vector<80x16xf32> to vector<16x16xf32>
    %c2_90 = arith.constant 2 : index
    %c1_91 = arith.constant 1 : index
    %c0_92 = arith.constant 0 : index
    %c0_93 = arith.constant 0 : index
    %83 = vector.load %arg4[%c2_90, %c1_91, %c0_92, %c0_93] : memref<4x5x16x16xf32, #tpu.memory_space<vmem>>, vector<1x1x16x16xf32>
    %84 = vector.shape_cast %83 : vector<1x1x16x16xf32> to vector<16x16xf32>
    %cst_94 = arith.constant dense<0.000000e+00> : vector<16x16xf32>
    %85 = tpu.matmul %82, %84, %cst_94 {dimension_numbers = #tpu.dot_dimension_numbers<[1], [0], [0], [1], [0, 0, 1, 1], [], []>} : vector<16x16xf32>, vector<16x16xf32>, vector<16x16xf32> -> vector<16x16xf32>
    %86 = arith.addf %81, %85 : vector<16x16xf32>
    %87 = vector.extract_strided_slice %77 {offsets = [32, 0], sizes = [16, 16], strides = [1, 1]} : vector<80x16xf32> to vector<16x16xf32>
    %c2_95 = arith.constant 2 : index
    %c2_96 = arith.constant 2 : index
    %c0_97 = arith.constant 0 : index
    %c0_98 = arith.constant 0 : index
    %88 = vector.load %arg4[%c2_95, %c2_96, %c0_97, %c0_98] : memref<4x5x16x16xf32, #tpu.memory_space<vmem>>, vector<1x1x16x16xf32>
    %89 = vector.shape_cast %88 : vector<1x1x16x16xf32> to vector<16x16xf32>
    %cst_99 = arith.constant dense<0.000000e+00> : vector<16x16xf32>
    %90 = tpu.matmul %87, %89, %cst_99 {dimension_numbers = #tpu.dot_dimension_numbers<[1], [0], [0], [1], [0, 0, 1, 1], [], []>} : vector<16x16xf32>, vector<16x16xf32>, vector<16x16xf32> -> vector<16x16xf32>
    %91 = arith.addf %86, %90 : vector<16x16xf32>
    %92 = vector.extract_strided_slice %77 {offsets = [48, 0], sizes = [16, 16], strides = [1, 1]} : vector<80x16xf32> to vector<16x16xf32>
    %c2_100 = arith.constant 2 : index
    %c3_101 = arith.constant 3 : index
    %c0_102 = arith.constant 0 : index
    %c0_103 = arith.constant 0 : index
    %93 = vector.load %arg4[%c2_100, %c3_101, %c0_102, %c0_103] : memref<4x5x16x16xf32, #tpu.memory_space<vmem>>, vector<1x1x16x16xf32>
    %94 = vector.shape_cast %93 : vector<1x1x16x16xf32> to vector<16x16xf32>
    %cst_104 = arith.constant dense<0.000000e+00> : vector<16x16xf32>
    %95 = tpu.matmul %92, %94, %cst_104 {dimension_numbers = #tpu.dot_dimension_numbers<[1], [0], [0], [1], [0, 0, 1, 1], [], []>} : vector<16x16xf32>, vector<16x16xf32>, vector<16x16xf32> -> vector<16x16xf32>
    %96 = arith.addf %91, %95 : vector<16x16xf32>
    %97 = vector.extract_strided_slice %77 {offsets = [64, 0], sizes = [16, 16], strides = [1, 1]} : vector<80x16xf32> to vector<16x16xf32>
    %c2_105 = arith.constant 2 : index
    %c4_106 = arith.constant 4 : index
    %c0_107 = arith.constant 0 : index
    %c0_108 = arith.constant 0 : index
    %98 = vector.load %arg4[%c2_105, %c4_106, %c0_107, %c0_108] : memref<4x5x16x16xf32, #tpu.memory_space<vmem>>, vector<1x1x16x16xf32>
    %99 = vector.shape_cast %98 : vector<1x1x16x16xf32> to vector<16x16xf32>
    %cst_109 = arith.constant dense<0.000000e+00> : vector<16x16xf32>
    %100 = tpu.matmul %97, %99, %cst_109 {dimension_numbers = #tpu.dot_dimension_numbers<[1], [0], [0], [1], [0, 0, 1, 1], [], []>} : vector<16x16xf32>, vector<16x16xf32>, vector<16x16xf32> -> vector<16x16xf32>
    %101 = arith.addf %96, %100 : vector<16x16xf32>
    %c2_110 = arith.constant 2 : index
    %102 = memref.load %arg5[%c2_110] : memref<4xf32, #tpu.memory_space<smem>>
    %103 = vector.broadcast %102 : f32 to vector<16x16xf32>
    %104 = arith.addf %101, %103 : vector<16x16xf32>
    %cst_111 = arith.constant 0.000000e+00 : f32
    %105 = vector.broadcast %cst_111 : f32 to vector<16x16xf32>
    %106 = arith.maximumf %104, %105 : vector<16x16xf32>
    %cst_112 = arith.constant dense<0.000000e+00> : vector<80x16xf32>
    %107 = tpu.matmul %0, %8, %cst_112 {dimension_numbers = #tpu.dot_dimension_numbers<[1], [0], [0], [1], [0, 0, 1, 1], [], []>} : vector<80x16xf32>, vector<16x16xf32>, vector<80x16xf32> -> vector<80x16xf32>
    %108 = vector.extract_strided_slice %107 {offsets = [0, 0], sizes = [16, 16], strides = [1, 1]} : vector<80x16xf32> to vector<16x16xf32>
    %c3_113 = arith.constant 3 : index
    %c0_114 = arith.constant 0 : index
    %c0_115 = arith.constant 0 : index
    %c0_116 = arith.constant 0 : index
    %109 = vector.load %arg4[%c3_113, %c0_114, %c0_115, %c0_116] : memref<4x5x16x16xf32, #tpu.memory_space<vmem>>, vector<1x1x16x16xf32>
    %110 = vector.shape_cast %109 : vector<1x1x16x16xf32> to vector<16x16xf32>
    %cst_117 = arith.constant dense<0.000000e+00> : vector<16x16xf32>
    %111 = tpu.matmul %108, %110, %cst_117 {dimension_numbers = #tpu.dot_dimension_numbers<[1], [0], [0], [1], [0, 0, 1, 1], [], []>} : vector<16x16xf32>, vector<16x16xf32>, vector<16x16xf32> -> vector<16x16xf32>
    %112 = vector.extract_strided_slice %107 {offsets = [16, 0], sizes = [16, 16], strides = [1, 1]} : vector<80x16xf32> to vector<16x16xf32>
    %c3_118 = arith.constant 3 : index
    %c1_119 = arith.constant 1 : index
    %c0_120 = arith.constant 0 : index
    %c0_121 = arith.constant 0 : index
    %113 = vector.load %arg4[%c3_118, %c1_119, %c0_120, %c0_121] : memref<4x5x16x16xf32, #tpu.memory_space<vmem>>, vector<1x1x16x16xf32>
    %114 = vector.shape_cast %113 : vector<1x1x16x16xf32> to vector<16x16xf32>
    %cst_122 = arith.constant dense<0.000000e+00> : vector<16x16xf32>
    %115 = tpu.matmul %112, %114, %cst_122 {dimension_numbers = #tpu.dot_dimension_numbers<[1], [0], [0], [1], [0, 0, 1, 1], [], []>} : vector<16x16xf32>, vector<16x16xf32>, vector<16x16xf32> -> vector<16x16xf32>
    %116 = arith.addf %111, %115 : vector<16x16xf32>
    %117 = vector.extract_strided_slice %107 {offsets = [32, 0], sizes = [16, 16], strides = [1, 1]} : vector<80x16xf32> to vector<16x16xf32>
    %c3_123 = arith.constant 3 : index
    %c2_124 = arith.constant 2 : index
    %c0_125 = arith.constant 0 : index
    %c0_126 = arith.constant 0 : index
    %118 = vector.load %arg4[%c3_123, %c2_124, %c0_125, %c0_126] : memref<4x5x16x16xf32, #tpu.memory_space<vmem>>, vector<1x1x16x16xf32>
    %119 = vector.shape_cast %118 : vector<1x1x16x16xf32> to vector<16x16xf32>
    %cst_127 = arith.constant dense<0.000000e+00> : vector<16x16xf32>
    %120 = tpu.matmul %117, %119, %cst_127 {dimension_numbers = #tpu.dot_dimension_numbers<[1], [0], [0], [1], [0, 0, 1, 1], [], []>} : vector<16x16xf32>, vector<16x16xf32>, vector<16x16xf32> -> vector<16x16xf32>
    %121 = arith.addf %116, %120 : vector<16x16xf32>
    %122 = vector.extract_strided_slice %107 {offsets = [48, 0], sizes = [16, 16], strides = [1, 1]} : vector<80x16xf32> to vector<16x16xf32>
    %c3_128 = arith.constant 3 : index
    %c3_129 = arith.constant 3 : index
    %c0_130 = arith.constant 0 : index
    %c0_131 = arith.constant 0 : index
    %123 = vector.load %arg4[%c3_128, %c3_129, %c0_130, %c0_131] : memref<4x5x16x16xf32, #tpu.memory_space<vmem>>, vector<1x1x16x16xf32>
    %124 = vector.shape_cast %123 : vector<1x1x16x16xf32> to vector<16x16xf32>
    %cst_132 = arith.constant dense<0.000000e+00> : vector<16x16xf32>
    %125 = tpu.matmul %122, %124, %cst_132 {dimension_numbers = #tpu.dot_dimension_numbers<[1], [0], [0], [1], [0, 0, 1, 1], [], []>} : vector<16x16xf32>, vector<16x16xf32>, vector<16x16xf32> -> vector<16x16xf32>
    %126 = arith.addf %121, %125 : vector<16x16xf32>
    %127 = vector.extract_strided_slice %107 {offsets = [64, 0], sizes = [16, 16], strides = [1, 1]} : vector<80x16xf32> to vector<16x16xf32>
    %c3_133 = arith.constant 3 : index
    %c4_134 = arith.constant 4 : index
    %c0_135 = arith.constant 0 : index
    %c0_136 = arith.constant 0 : index
    %128 = vector.load %arg4[%c3_133, %c4_134, %c0_135, %c0_136] : memref<4x5x16x16xf32, #tpu.memory_space<vmem>>, vector<1x1x16x16xf32>
    %129 = vector.shape_cast %128 : vector<1x1x16x16xf32> to vector<16x16xf32>
    %cst_137 = arith.constant dense<0.000000e+00> : vector<16x16xf32>
    %130 = tpu.matmul %127, %129, %cst_137 {dimension_numbers = #tpu.dot_dimension_numbers<[1], [0], [0], [1], [0, 0, 1, 1], [], []>} : vector<16x16xf32>, vector<16x16xf32>, vector<16x16xf32> -> vector<16x16xf32>
    %131 = arith.addf %126, %130 : vector<16x16xf32>
    %c3_138 = arith.constant 3 : index
    %132 = memref.load %arg5[%c3_138] : memref<4xf32, #tpu.memory_space<smem>>
    %133 = vector.broadcast %132 : f32 to vector<16x16xf32>
    %134 = arith.addf %131, %133 : vector<16x16xf32>
    %cst_139 = arith.constant 0.000000e+00 : f32
    %135 = vector.broadcast %cst_139 : f32 to vector<16x16xf32>
    %136 = arith.maximumf %134, %135 : vector<16x16xf32>
    %c0_140 = arith.constant 0 : index
    %c0_141 = arith.constant 0 : index
    %137 = memref.load %arg6[%c0_140, %c0_141] : memref<4x4xf32, #tpu.memory_space<smem>>
    %138 = vector.broadcast %137 : f32 to vector<16x16xf32>
    %139 = arith.mulf %46, %138 : vector<16x16xf32>
    %c1_142 = arith.constant 1 : index
    %c0_143 = arith.constant 0 : index
    %140 = memref.load %arg6[%c1_142, %c0_143] : memref<4x4xf32, #tpu.memory_space<smem>>
    %141 = vector.broadcast %140 : f32 to vector<16x16xf32>
    %142 = arith.mulf %76, %141 : vector<16x16xf32>
    %143 = arith.addf %139, %142 : vector<16x16xf32>
    %c2_144 = arith.constant 2 : index
    %c0_145 = arith.constant 0 : index
    %144 = memref.load %arg6[%c2_144, %c0_145] : memref<4x4xf32, #tpu.memory_space<smem>>
    %145 = vector.broadcast %144 : f32 to vector<16x16xf32>
    %146 = arith.mulf %106, %145 : vector<16x16xf32>
    %147 = arith.addf %143, %146 : vector<16x16xf32>
    %c3_146 = arith.constant 3 : index
    %c0_147 = arith.constant 0 : index
    %148 = memref.load %arg6[%c3_146, %c0_147] : memref<4x4xf32, #tpu.memory_space<smem>>
    %149 = vector.broadcast %148 : f32 to vector<16x16xf32>
    %150 = arith.mulf %136, %149 : vector<16x16xf32>
    %151 = arith.addf %147, %150 : vector<16x16xf32>
    %c0_148 = arith.constant 0 : index
    %152 = memref.load %arg7[%c0_148] : memref<4xf32, #tpu.memory_space<smem>>
    %153 = vector.broadcast %152 : f32 to vector<16x16xf32>
    %154 = arith.addf %151, %153 : vector<16x16xf32>
    %155 = math.tanh %154 : vector<16x16xf32>
    %c0_149 = arith.constant 0 : index
    %c1_150 = arith.constant 1 : index
    %156 = memref.load %arg6[%c0_149, %c1_150] : memref<4x4xf32, #tpu.memory_space<smem>>
    %157 = vector.broadcast %156 : f32 to vector<16x16xf32>
    %158 = arith.mulf %46, %157 : vector<16x16xf32>
    %c1_151 = arith.constant 1 : index
    %c1_152 = arith.constant 1 : index
    %159 = memref.load %arg6[%c1_151, %c1_152] : memref<4x4xf32, #tpu.memory_space<smem>>
    %160 = vector.broadcast %159 : f32 to vector<16x16xf32>
    %161 = arith.mulf %76, %160 : vector<16x16xf32>
    %162 = arith.addf %158, %161 : vector<16x16xf32>
    %c2_153 = arith.constant 2 : index
    %c1_154 = arith.constant 1 : index
    %163 = memref.load %arg6[%c2_153, %c1_154] : memref<4x4xf32, #tpu.memory_space<smem>>
    %164 = vector.broadcast %163 : f32 to vector<16x16xf32>
    %165 = arith.mulf %106, %164 : vector<16x16xf32>
    %166 = arith.addf %162, %165 : vector<16x16xf32>
    %c3_155 = arith.constant 3 : index
    %c1_156 = arith.constant 1 : index
    %167 = memref.load %arg6[%c3_155, %c1_156] : memref<4x4xf32, #tpu.memory_space<smem>>
    %168 = vector.broadcast %167 : f32 to vector<16x16xf32>
    %169 = arith.mulf %136, %168 : vector<16x16xf32>
    %170 = arith.addf %166, %169 : vector<16x16xf32>
    %c1_157 = arith.constant 1 : index
    %171 = memref.load %arg7[%c1_157] : memref<4xf32, #tpu.memory_space<smem>>
    %172 = vector.broadcast %171 : f32 to vector<16x16xf32>
    %173 = arith.addf %170, %172 : vector<16x16xf32>
    %174 = math.tanh %173 : vector<16x16xf32>
    %c0_158 = arith.constant 0 : index
    %c2_159 = arith.constant 2 : index
    %175 = memref.load %arg6[%c0_158, %c2_159] : memref<4x4xf32, #tpu.memory_space<smem>>
    %176 = vector.broadcast %175 : f32 to vector<16x16xf32>
    %177 = arith.mulf %46, %176 : vector<16x16xf32>
    %c1_160 = arith.constant 1 : index
    %c2_161 = arith.constant 2 : index
    %178 = memref.load %arg6[%c1_160, %c2_161] : memref<4x4xf32, #tpu.memory_space<smem>>
    %179 = vector.broadcast %178 : f32 to vector<16x16xf32>
    %180 = arith.mulf %76, %179 : vector<16x16xf32>
    %181 = arith.addf %177, %180 : vector<16x16xf32>
    %c2_162 = arith.constant 2 : index
    %c2_163 = arith.constant 2 : index
    %182 = memref.load %arg6[%c2_162, %c2_163] : memref<4x4xf32, #tpu.memory_space<smem>>
    %183 = vector.broadcast %182 : f32 to vector<16x16xf32>
    %184 = arith.mulf %106, %183 : vector<16x16xf32>
    %185 = arith.addf %181, %184 : vector<16x16xf32>
    %c3_164 = arith.constant 3 : index
    %c2_165 = arith.constant 2 : index
    %186 = memref.load %arg6[%c3_164, %c2_165] : memref<4x4xf32, #tpu.memory_space<smem>>
    %187 = vector.broadcast %186 : f32 to vector<16x16xf32>
    %188 = arith.mulf %136, %187 : vector<16x16xf32>
    %189 = arith.addf %185, %188 : vector<16x16xf32>
    %c2_166 = arith.constant 2 : index
    %190 = memref.load %arg7[%c2_166] : memref<4xf32, #tpu.memory_space<smem>>
    %191 = vector.broadcast %190 : f32 to vector<16x16xf32>
    %192 = arith.addf %189, %191 : vector<16x16xf32>
    %193 = math.tanh %192 : vector<16x16xf32>
    %c0_167 = arith.constant 0 : index
    %c3_168 = arith.constant 3 : index
    %194 = memref.load %arg6[%c0_167, %c3_168] : memref<4x4xf32, #tpu.memory_space<smem>>
    %195 = vector.broadcast %194 : f32 to vector<16x16xf32>
    %196 = arith.mulf %46, %195 : vector<16x16xf32>
    %c1_169 = arith.constant 1 : index
    %c3_170 = arith.constant 3 : index
    %197 = memref.load %arg6[%c1_169, %c3_170] : memref<4x4xf32, #tpu.memory_space<smem>>
    %198 = vector.broadcast %197 : f32 to vector<16x16xf32>
    %199 = arith.mulf %76, %198 : vector<16x16xf32>
    %200 = arith.addf %196, %199 : vector<16x16xf32>
    %c2_171 = arith.constant 2 : index
    %c3_172 = arith.constant 3 : index
    %201 = memref.load %arg6[%c2_171, %c3_172] : memref<4x4xf32, #tpu.memory_space<smem>>
    %202 = vector.broadcast %201 : f32 to vector<16x16xf32>
    %203 = arith.mulf %106, %202 : vector<16x16xf32>
    %204 = arith.addf %200, %203 : vector<16x16xf32>
    %c3_173 = arith.constant 3 : index
    %c3_174 = arith.constant 3 : index
    %205 = memref.load %arg6[%c3_173, %c3_174] : memref<4x4xf32, #tpu.memory_space<smem>>
    %206 = vector.broadcast %205 : f32 to vector<16x16xf32>
    %207 = arith.mulf %136, %206 : vector<16x16xf32>
    %208 = arith.addf %204, %207 : vector<16x16xf32>
    %c3_175 = arith.constant 3 : index
    %209 = memref.load %arg7[%c3_175] : memref<4xf32, #tpu.memory_space<smem>>
    %210 = vector.broadcast %209 : f32 to vector<16x16xf32>
    %211 = arith.addf %208, %210 : vector<16x16xf32>
    %212 = math.tanh %211 : vector<16x16xf32>
    %213 = arith.subf %10, %155 : vector<16x16xf32>
    %214 = arith.subf %12, %174 : vector<16x16xf32>
    %215 = arith.subf %14, %193 : vector<16x16xf32>
    %216 = arith.subf %16, %212 : vector<16x16xf32>
    %cst_176 = arith.constant dense<0.000000e+00> : vector<80x16xf32>
    %217 = tpu.matmul %0, %213, %cst_176 {dimension_numbers = #tpu.dot_dimension_numbers<[1], [0], [0], [1], [0, 0, 1, 1], [], []>} : vector<80x16xf32>, vector<16x16xf32>, vector<80x16xf32> -> vector<80x16xf32>
    %218 = vector.extract_strided_slice %217 {offsets = [0, 0], sizes = [16, 16], strides = [1, 1]} : vector<80x16xf32> to vector<16x16xf32>
    %c0_177 = arith.constant 0 : index
    %c0_178 = arith.constant 0 : index
    %c0_179 = arith.constant 0 : index
    %c0_180 = arith.constant 0 : index
    %219 = vector.load %arg8[%c0_177, %c0_178, %c0_179, %c0_180] : memref<4x5x16x16xf32, #tpu.memory_space<vmem>>, vector<1x1x16x16xf32>
    %220 = vector.shape_cast %219 : vector<1x1x16x16xf32> to vector<16x16xf32>
    %cst_181 = arith.constant dense<0.000000e+00> : vector<16x16xf32>
    %221 = tpu.matmul %218, %220, %cst_181 {dimension_numbers = #tpu.dot_dimension_numbers<[1], [0], [0], [1], [0, 0, 1, 1], [], []>} : vector<16x16xf32>, vector<16x16xf32>, vector<16x16xf32> -> vector<16x16xf32>
    %222 = vector.extract_strided_slice %217 {offsets = [16, 0], sizes = [16, 16], strides = [1, 1]} : vector<80x16xf32> to vector<16x16xf32>
    %c0_182 = arith.constant 0 : index
    %c1_183 = arith.constant 1 : index
    %c0_184 = arith.constant 0 : index
    %c0_185 = arith.constant 0 : index
    %223 = vector.load %arg8[%c0_182, %c1_183, %c0_184, %c0_185] : memref<4x5x16x16xf32, #tpu.memory_space<vmem>>, vector<1x1x16x16xf32>
    %224 = vector.shape_cast %223 : vector<1x1x16x16xf32> to vector<16x16xf32>
    %cst_186 = arith.constant dense<0.000000e+00> : vector<16x16xf32>
    %225 = tpu.matmul %222, %224, %cst_186 {dimension_numbers = #tpu.dot_dimension_numbers<[1], [0], [0], [1], [0, 0, 1, 1], [], []>} : vector<16x16xf32>, vector<16x16xf32>, vector<16x16xf32> -> vector<16x16xf32>
    %226 = arith.addf %221, %225 : vector<16x16xf32>
    %227 = vector.extract_strided_slice %217 {offsets = [32, 0], sizes = [16, 16], strides = [1, 1]} : vector<80x16xf32> to vector<16x16xf32>
    %c0_187 = arith.constant 0 : index
    %c2_188 = arith.constant 2 : index
    %c0_189 = arith.constant 0 : index
    %c0_190 = arith.constant 0 : index
    %228 = vector.load %arg8[%c0_187, %c2_188, %c0_189, %c0_190] : memref<4x5x16x16xf32, #tpu.memory_space<vmem>>, vector<1x1x16x16xf32>
    %229 = vector.shape_cast %228 : vector<1x1x16x16xf32> to vector<16x16xf32>
    %cst_191 = arith.constant dense<0.000000e+00> : vector<16x16xf32>
    %230 = tpu.matmul %227, %229, %cst_191 {dimension_numbers = #tpu.dot_dimension_numbers<[1], [0], [0], [1], [0, 0, 1, 1], [], []>} : vector<16x16xf32>, vector<16x16xf32>, vector<16x16xf32> -> vector<16x16xf32>
    %231 = arith.addf %226, %230 : vector<16x16xf32>
    %232 = vector.extract_strided_slice %217 {offsets = [48, 0], sizes = [16, 16], strides = [1, 1]} : vector<80x16xf32> to vector<16x16xf32>
    %c0_192 = arith.constant 0 : index
    %c3_193 = arith.constant 3 : index
    %c0_194 = arith.constant 0 : index
    %c0_195 = arith.constant 0 : index
    %233 = vector.load %arg8[%c0_192, %c3_193, %c0_194, %c0_195] : memref<4x5x16x16xf32, #tpu.memory_space<vmem>>, vector<1x1x16x16xf32>
    %234 = vector.shape_cast %233 : vector<1x1x16x16xf32> to vector<16x16xf32>
    %cst_196 = arith.constant dense<0.000000e+00> : vector<16x16xf32>
    %235 = tpu.matmul %232, %234, %cst_196 {dimension_numbers = #tpu.dot_dimension_numbers<[1], [0], [0], [1], [0, 0, 1, 1], [], []>} : vector<16x16xf32>, vector<16x16xf32>, vector<16x16xf32> -> vector<16x16xf32>
    %236 = arith.addf %231, %235 : vector<16x16xf32>
    %237 = vector.extract_strided_slice %217 {offsets = [64, 0], sizes = [16, 16], strides = [1, 1]} : vector<80x16xf32> to vector<16x16xf32>
    %c0_197 = arith.constant 0 : index
    %c4_198 = arith.constant 4 : index
    %c0_199 = arith.constant 0 : index
    %c0_200 = arith.constant 0 : index
    %238 = vector.load %arg8[%c0_197, %c4_198, %c0_199, %c0_200] : memref<4x5x16x16xf32, #tpu.memory_space<vmem>>, vector<1x1x16x16xf32>
    %239 = vector.shape_cast %238 : vector<1x1x16x16xf32> to vector<16x16xf32>
    %cst_201 = arith.constant dense<0.000000e+00> : vector<16x16xf32>
    %240 = tpu.matmul %237, %239, %cst_201 {dimension_numbers = #tpu.dot_dimension_numbers<[1], [0], [0], [1], [0, 0, 1, 1], [], []>} : vector<16x16xf32>, vector<16x16xf32>, vector<16x16xf32> -> vector<16x16xf32>
    %241 = arith.addf %236, %240 : vector<16x16xf32>
    %c0_202 = arith.constant 0 : index
    %242 = memref.load %arg9[%c0_202] : memref<4xf32, #tpu.memory_space<smem>>
    %243 = vector.broadcast %242 : f32 to vector<16x16xf32>
    %244 = arith.addf %241, %243 : vector<16x16xf32>
    %cst_203 = arith.constant 0.000000e+00 : f32
    %245 = vector.broadcast %cst_203 : f32 to vector<16x16xf32>
    %246 = arith.maximumf %244, %245 : vector<16x16xf32>
    %cst_204 = arith.constant dense<0.000000e+00> : vector<80x16xf32>
    %247 = tpu.matmul %0, %214, %cst_204 {dimension_numbers = #tpu.dot_dimension_numbers<[1], [0], [0], [1], [0, 0, 1, 1], [], []>} : vector<80x16xf32>, vector<16x16xf32>, vector<80x16xf32> -> vector<80x16xf32>
    %248 = vector.extract_strided_slice %247 {offsets = [0, 0], sizes = [16, 16], strides = [1, 1]} : vector<80x16xf32> to vector<16x16xf32>
    %c1_205 = arith.constant 1 : index
    %c0_206 = arith.constant 0 : index
    %c0_207 = arith.constant 0 : index
    %c0_208 = arith.constant 0 : index
    %249 = vector.load %arg8[%c1_205, %c0_206, %c0_207, %c0_208] : memref<4x5x16x16xf32, #tpu.memory_space<vmem>>, vector<1x1x16x16xf32>
    %250 = vector.shape_cast %249 : vector<1x1x16x16xf32> to vector<16x16xf32>
    %cst_209 = arith.constant dense<0.000000e+00> : vector<16x16xf32>
    %251 = tpu.matmul %248, %250, %cst_209 {dimension_numbers = #tpu.dot_dimension_numbers<[1], [0], [0], [1], [0, 0, 1, 1], [], []>} : vector<16x16xf32>, vector<16x16xf32>, vector<16x16xf32> -> vector<16x16xf32>
    %252 = vector.extract_strided_slice %247 {offsets = [16, 0], sizes = [16, 16], strides = [1, 1]} : vector<80x16xf32> to vector<16x16xf32>
    %c1_210 = arith.constant 1 : index
    %c1_211 = arith.constant 1 : index
    %c0_212 = arith.constant 0 : index
    %c0_213 = arith.constant 0 : index
    %253 = vector.load %arg8[%c1_210, %c1_211, %c0_212, %c0_213] : memref<4x5x16x16xf32, #tpu.memory_space<vmem>>, vector<1x1x16x16xf32>
    %254 = vector.shape_cast %253 : vector<1x1x16x16xf32> to vector<16x16xf32>
    %cst_214 = arith.constant dense<0.000000e+00> : vector<16x16xf32>
    %255 = tpu.matmul %252, %254, %cst_214 {dimension_numbers = #tpu.dot_dimension_numbers<[1], [0], [0], [1], [0, 0, 1, 1], [], []>} : vector<16x16xf32>, vector<16x16xf32>, vector<16x16xf32> -> vector<16x16xf32>
    %256 = arith.addf %251, %255 : vector<16x16xf32>
    %257 = vector.extract_strided_slice %247 {offsets = [32, 0], sizes = [16, 16], strides = [1, 1]} : vector<80x16xf32> to vector<16x16xf32>
    %c1_215 = arith.constant 1 : index
    %c2_216 = arith.constant 2 : index
    %c0_217 = arith.constant 0 : index
    %c0_218 = arith.constant 0 : index
    %258 = vector.load %arg8[%c1_215, %c2_216, %c0_217, %c0_218] : memref<4x5x16x16xf32, #tpu.memory_space<vmem>>, vector<1x1x16x16xf32>
    %259 = vector.shape_cast %258 : vector<1x1x16x16xf32> to vector<16x16xf32>
    %cst_219 = arith.constant dense<0.000000e+00> : vector<16x16xf32>
    %260 = tpu.matmul %257, %259, %cst_219 {dimension_numbers = #tpu.dot_dimension_numbers<[1], [0], [0], [1], [0, 0, 1, 1], [], []>} : vector<16x16xf32>, vector<16x16xf32>, vector<16x16xf32> -> vector<16x16xf32>
    %261 = arith.addf %256, %260 : vector<16x16xf32>
    %262 = vector.extract_strided_slice %247 {offsets = [48, 0], sizes = [16, 16], strides = [1, 1]} : vector<80x16xf32> to vector<16x16xf32>
    %c1_220 = arith.constant 1 : index
    %c3_221 = arith.constant 3 : index
    %c0_222 = arith.constant 0 : index
    %c0_223 = arith.constant 0 : index
    %263 = vector.load %arg8[%c1_220, %c3_221, %c0_222, %c0_223] : memref<4x5x16x16xf32, #tpu.memory_space<vmem>>, vector<1x1x16x16xf32>
    %264 = vector.shape_cast %263 : vector<1x1x16x16xf32> to vector<16x16xf32>
    %cst_224 = arith.constant dense<0.000000e+00> : vector<16x16xf32>
    %265 = tpu.matmul %262, %264, %cst_224 {dimension_numbers = #tpu.dot_dimension_numbers<[1], [0], [0], [1], [0, 0, 1, 1], [], []>} : vector<16x16xf32>, vector<16x16xf32>, vector<16x16xf32> -> vector<16x16xf32>
    %266 = arith.addf %261, %265 : vector<16x16xf32>
    %267 = vector.extract_strided_slice %247 {offsets = [64, 0], sizes = [16, 16], strides = [1, 1]} : vector<80x16xf32> to vector<16x16xf32>
    %c1_225 = arith.constant 1 : index
    %c4_226 = arith.constant 4 : index
    %c0_227 = arith.constant 0 : index
    %c0_228 = arith.constant 0 : index
    %268 = vector.load %arg8[%c1_225, %c4_226, %c0_227, %c0_228] : memref<4x5x16x16xf32, #tpu.memory_space<vmem>>, vector<1x1x16x16xf32>
    %269 = vector.shape_cast %268 : vector<1x1x16x16xf32> to vector<16x16xf32>
    %cst_229 = arith.constant dense<0.000000e+00> : vector<16x16xf32>
    %270 = tpu.matmul %267, %269, %cst_229 {dimension_numbers = #tpu.dot_dimension_numbers<[1], [0], [0], [1], [0, 0, 1, 1], [], []>} : vector<16x16xf32>, vector<16x16xf32>, vector<16x16xf32> -> vector<16x16xf32>
    %271 = arith.addf %266, %270 : vector<16x16xf32>
    %c1_230 = arith.constant 1 : index
    %272 = memref.load %arg9[%c1_230] : memref<4xf32, #tpu.memory_space<smem>>
    %273 = vector.broadcast %272 : f32 to vector<16x16xf32>
    %274 = arith.addf %271, %273 : vector<16x16xf32>
    %cst_231 = arith.constant 0.000000e+00 : f32
    %275 = vector.broadcast %cst_231 : f32 to vector<16x16xf32>
    %276 = arith.maximumf %274, %275 : vector<16x16xf32>
    %cst_232 = arith.constant dense<0.000000e+00> : vector<80x16xf32>
    %277 = tpu.matmul %0, %215, %cst_232 {dimension_numbers = #tpu.dot_dimension_numbers<[1], [0], [0], [1], [0, 0, 1, 1], [], []>} : vector<80x16xf32>, vector<16x16xf32>, vector<80x16xf32> -> vector<80x16xf32>
    %278 = vector.extract_strided_slice %277 {offsets = [0, 0], sizes = [16, 16], strides = [1, 1]} : vector<80x16xf32> to vector<16x16xf32>
    %c2_233 = arith.constant 2 : index
    %c0_234 = arith.constant 0 : index
    %c0_235 = arith.constant 0 : index
    %c0_236 = arith.constant 0 : index
    %279 = vector.load %arg8[%c2_233, %c0_234, %c0_235, %c0_236] : memref<4x5x16x16xf32, #tpu.memory_space<vmem>>, vector<1x1x16x16xf32>
    %280 = vector.shape_cast %279 : vector<1x1x16x16xf32> to vector<16x16xf32>
    %cst_237 = arith.constant dense<0.000000e+00> : vector<16x16xf32>
    %281 = tpu.matmul %278, %280, %cst_237 {dimension_numbers = #tpu.dot_dimension_numbers<[1], [0], [0], [1], [0, 0, 1, 1], [], []>} : vector<16x16xf32>, vector<16x16xf32>, vector<16x16xf32> -> vector<16x16xf32>
    %282 = vector.extract_strided_slice %277 {offsets = [16, 0], sizes = [16, 16], strides = [1, 1]} : vector<80x16xf32> to vector<16x16xf32>
    %c2_238 = arith.constant 2 : index
    %c1_239 = arith.constant 1 : index
    %c0_240 = arith.constant 0 : index
    %c0_241 = arith.constant 0 : index
    %283 = vector.load %arg8[%c2_238, %c1_239, %c0_240, %c0_241] : memref<4x5x16x16xf32, #tpu.memory_space<vmem>>, vector<1x1x16x16xf32>
    %284 = vector.shape_cast %283 : vector<1x1x16x16xf32> to vector<16x16xf32>
    %cst_242 = arith.constant dense<0.000000e+00> : vector<16x16xf32>
    %285 = tpu.matmul %282, %284, %cst_242 {dimension_numbers = #tpu.dot_dimension_numbers<[1], [0], [0], [1], [0, 0, 1, 1], [], []>} : vector<16x16xf32>, vector<16x16xf32>, vector<16x16xf32> -> vector<16x16xf32>
    %286 = arith.addf %281, %285 : vector<16x16xf32>
    %287 = vector.extract_strided_slice %277 {offsets = [32, 0], sizes = [16, 16], strides = [1, 1]} : vector<80x16xf32> to vector<16x16xf32>
    %c2_243 = arith.constant 2 : index
    %c2_244 = arith.constant 2 : index
    %c0_245 = arith.constant 0 : index
    %c0_246 = arith.constant 0 : index
    %288 = vector.load %arg8[%c2_243, %c2_244, %c0_245, %c0_246] : memref<4x5x16x16xf32, #tpu.memory_space<vmem>>, vector<1x1x16x16xf32>
    %289 = vector.shape_cast %288 : vector<1x1x16x16xf32> to vector<16x16xf32>
    %cst_247 = arith.constant dense<0.000000e+00> : vector<16x16xf32>
    %290 = tpu.matmul %287, %289, %cst_247 {dimension_numbers = #tpu.dot_dimension_numbers<[1], [0], [0], [1], [0, 0, 1, 1], [], []>} : vector<16x16xf32>, vector<16x16xf32>, vector<16x16xf32> -> vector<16x16xf32>
    %291 = arith.addf %286, %290 : vector<16x16xf32>
    %292 = vector.extract_strided_slice %277 {offsets = [48, 0], sizes = [16, 16], strides = [1, 1]} : vector<80x16xf32> to vector<16x16xf32>
    %c2_248 = arith.constant 2 : index
    %c3_249 = arith.constant 3 : index
    %c0_250 = arith.constant 0 : index
    %c0_251 = arith.constant 0 : index
    %293 = vector.load %arg8[%c2_248, %c3_249, %c0_250, %c0_251] : memref<4x5x16x16xf32, #tpu.memory_space<vmem>>, vector<1x1x16x16xf32>
    %294 = vector.shape_cast %293 : vector<1x1x16x16xf32> to vector<16x16xf32>
    %cst_252 = arith.constant dense<0.000000e+00> : vector<16x16xf32>
    %295 = tpu.matmul %292, %294, %cst_252 {dimension_numbers = #tpu.dot_dimension_numbers<[1], [0], [0], [1], [0, 0, 1, 1], [], []>} : vector<16x16xf32>, vector<16x16xf32>, vector<16x16xf32> -> vector<16x16xf32>
    %296 = arith.addf %291, %295 : vector<16x16xf32>
    %297 = vector.extract_strided_slice %277 {offsets = [64, 0], sizes = [16, 16], strides = [1, 1]} : vector<80x16xf32> to vector<16x16xf32>
    %c2_253 = arith.constant 2 : index
    %c4_254 = arith.constant 4 : index
    %c0_255 = arith.constant 0 : index
    %c0_256 = arith.constant 0 : index
    %298 = vector.load %arg8[%c2_253, %c4_254, %c0_255, %c0_256] : memref<4x5x16x16xf32, #tpu.memory_space<vmem>>, vector<1x1x16x16xf32>
    %299 = vector.shape_cast %298 : vector<1x1x16x16xf32> to vector<16x16xf32>
    %cst_257 = arith.constant dense<0.000000e+00> : vector<16x16xf32>
    %300 = tpu.matmul %297, %299, %cst_257 {dimension_numbers = #tpu.dot_dimension_numbers<[1], [0], [0], [1], [0, 0, 1, 1], [], []>} : vector<16x16xf32>, vector<16x16xf32>, vector<16x16xf32> -> vector<16x16xf32>
    %301 = arith.addf %296, %300 : vector<16x16xf32>
    %c2_258 = arith.constant 2 : index
    %302 = memref.load %arg9[%c2_258] : memref<4xf32, #tpu.memory_space<smem>>
    %303 = vector.broadcast %302 : f32 to vector<16x16xf32>
    %304 = arith.addf %301, %303 : vector<16x16xf32>
    %cst_259 = arith.constant 0.000000e+00 : f32
    %305 = vector.broadcast %cst_259 : f32 to vector<16x16xf32>
    %306 = arith.maximumf %304, %305 : vector<16x16xf32>
    %cst_260 = arith.constant dense<0.000000e+00> : vector<80x16xf32>
    %307 = tpu.matmul %0, %216, %cst_260 {dimension_numbers = #tpu.dot_dimension_numbers<[1], [0], [0], [1], [0, 0, 1, 1], [], []>} : vector<80x16xf32>, vector<16x16xf32>, vector<80x16xf32> -> vector<80x16xf32>
    %308 = vector.extract_strided_slice %307 {offsets = [0, 0], sizes = [16, 16], strides = [1, 1]} : vector<80x16xf32> to vector<16x16xf32>
    %c3_261 = arith.constant 3 : index
    %c0_262 = arith.constant 0 : index
    %c0_263 = arith.constant 0 : index
    %c0_264 = arith.constant 0 : index
    %309 = vector.load %arg8[%c3_261, %c0_262, %c0_263, %c0_264] : memref<4x5x16x16xf32, #tpu.memory_space<vmem>>, vector<1x1x16x16xf32>
    %310 = vector.shape_cast %309 : vector<1x1x16x16xf32> to vector<16x16xf32>
    %cst_265 = arith.constant dense<0.000000e+00> : vector<16x16xf32>
    %311 = tpu.matmul %308, %310, %cst_265 {dimension_numbers = #tpu.dot_dimension_numbers<[1], [0], [0], [1], [0, 0, 1, 1], [], []>} : vector<16x16xf32>, vector<16x16xf32>, vector<16x16xf32> -> vector<16x16xf32>
    %312 = vector.extract_strided_slice %307 {offsets = [16, 0], sizes = [16, 16], strides = [1, 1]} : vector<80x16xf32> to vector<16x16xf32>
    %c3_266 = arith.constant 3 : index
    %c1_267 = arith.constant 1 : index
    %c0_268 = arith.constant 0 : index
    %c0_269 = arith.constant 0 : index
    %313 = vector.load %arg8[%c3_266, %c1_267, %c0_268, %c0_269] : memref<4x5x16x16xf32, #tpu.memory_space<vmem>>, vector<1x1x16x16xf32>
    %314 = vector.shape_cast %313 : vector<1x1x16x16xf32> to vector<16x16xf32>
    %cst_270 = arith.constant dense<0.000000e+00> : vector<16x16xf32>
    %315 = tpu.matmul %312, %314, %cst_270 {dimension_numbers = #tpu.dot_dimension_numbers<[1], [0], [0], [1], [0, 0, 1, 1], [], []>} : vector<16x16xf32>, vector<16x16xf32>, vector<16x16xf32> -> vector<16x16xf32>
    %316 = arith.addf %311, %315 : vector<16x16xf32>
    %317 = vector.extract_strided_slice %307 {offsets = [32, 0], sizes = [16, 16], strides = [1, 1]} : vector<80x16xf32> to vector<16x16xf32>
    %c3_271 = arith.constant 3 : index
    %c2_272 = arith.constant 2 : index
    %c0_273 = arith.constant 0 : index
    %c0_274 = arith.constant 0 : index
    %318 = vector.load %arg8[%c3_271, %c2_272, %c0_273, %c0_274] : memref<4x5x16x16xf32, #tpu.memory_space<vmem>>, vector<1x1x16x16xf32>
    %319 = vector.shape_cast %318 : vector<1x1x16x16xf32> to vector<16x16xf32>
    %cst_275 = arith.constant dense<0.000000e+00> : vector<16x16xf32>
    %320 = tpu.matmul %317, %319, %cst_275 {dimension_numbers = #tpu.dot_dimension_numbers<[1], [0], [0], [1], [0, 0, 1, 1], [], []>} : vector<16x16xf32>, vector<16x16xf32>, vector<16x16xf32> -> vector<16x16xf32>
    %321 = arith.addf %316, %320 : vector<16x16xf32>
    %322 = vector.extract_strided_slice %307 {offsets = [48, 0], sizes = [16, 16], strides = [1, 1]} : vector<80x16xf32> to vector<16x16xf32>
    %c3_276 = arith.constant 3 : index
    %c3_277 = arith.constant 3 : index
    %c0_278 = arith.constant 0 : index
    %c0_279 = arith.constant 0 : index
    %323 = vector.load %arg8[%c3_276, %c3_277, %c0_278, %c0_279] : memref<4x5x16x16xf32, #tpu.memory_space<vmem>>, vector<1x1x16x16xf32>
    %324 = vector.shape_cast %323 : vector<1x1x16x16xf32> to vector<16x16xf32>
    %cst_280 = arith.constant dense<0.000000e+00> : vector<16x16xf32>
    %325 = tpu.matmul %322, %324, %cst_280 {dimension_numbers = #tpu.dot_dimension_numbers<[1], [0], [0], [1], [0, 0, 1, 1], [], []>} : vector<16x16xf32>, vector<16x16xf32>, vector<16x16xf32> -> vector<16x16xf32>
    %326 = arith.addf %321, %325 : vector<16x16xf32>
    %327 = vector.extract_strided_slice %307 {offsets = [64, 0], sizes = [16, 16], strides = [1, 1]} : vector<80x16xf32> to vector<16x16xf32>
    %c3_281 = arith.constant 3 : index
    %c4_282 = arith.constant 4 : index
    %c0_283 = arith.constant 0 : index
    %c0_284 = arith.constant 0 : index
    %328 = vector.load %arg8[%c3_281, %c4_282, %c0_283, %c0_284] : memref<4x5x16x16xf32, #tpu.memory_space<vmem>>, vector<1x1x16x16xf32>
    %329 = vector.shape_cast %328 : vector<1x1x16x16xf32> to vector<16x16xf32>
    %cst_285 = arith.constant dense<0.000000e+00> : vector<16x16xf32>
    %330 = tpu.matmul %327, %329, %cst_285 {dimension_numbers = #tpu.dot_dimension_numbers<[1], [0], [0], [1], [0, 0, 1, 1], [], []>} : vector<16x16xf32>, vector<16x16xf32>, vector<16x16xf32> -> vector<16x16xf32>
    %331 = arith.addf %326, %330 : vector<16x16xf32>
    %c3_286 = arith.constant 3 : index
    %332 = memref.load %arg9[%c3_286] : memref<4xf32, #tpu.memory_space<smem>>
    %333 = vector.broadcast %332 : f32 to vector<16x16xf32>
    %334 = arith.addf %331, %333 : vector<16x16xf32>
    %cst_287 = arith.constant 0.000000e+00 : f32
    %335 = vector.broadcast %cst_287 : f32 to vector<16x16xf32>
    %336 = arith.maximumf %334, %335 : vector<16x16xf32>
    %c0_288 = arith.constant 0 : index
    %c0_289 = arith.constant 0 : index
    %337 = memref.load %arg10[%c0_288, %c0_289] : memref<4x4xf32, #tpu.memory_space<smem>>
    %338 = vector.broadcast %337 : f32 to vector<16x16xf32>
    %339 = arith.mulf %246, %338 : vector<16x16xf32>
    %c1_290 = arith.constant 1 : index
    %c0_291 = arith.constant 0 : index
    %340 = memref.load %arg10[%c1_290, %c0_291] : memref<4x4xf32, #tpu.memory_space<smem>>
    %341 = vector.broadcast %340 : f32 to vector<16x16xf32>
    %342 = arith.mulf %276, %341 : vector<16x16xf32>
    %343 = arith.addf %339, %342 : vector<16x16xf32>
    %c2_292 = arith.constant 2 : index
    %c0_293 = arith.constant 0 : index
    %344 = memref.load %arg10[%c2_292, %c0_293] : memref<4x4xf32, #tpu.memory_space<smem>>
    %345 = vector.broadcast %344 : f32 to vector<16x16xf32>
    %346 = arith.mulf %306, %345 : vector<16x16xf32>
    %347 = arith.addf %343, %346 : vector<16x16xf32>
    %c3_294 = arith.constant 3 : index
    %c0_295 = arith.constant 0 : index
    %348 = memref.load %arg10[%c3_294, %c0_295] : memref<4x4xf32, #tpu.memory_space<smem>>
    %349 = vector.broadcast %348 : f32 to vector<16x16xf32>
    %350 = arith.mulf %336, %349 : vector<16x16xf32>
    %351 = arith.addf %347, %350 : vector<16x16xf32>
    %c0_296 = arith.constant 0 : index
    %352 = memref.load %arg11[%c0_296] : memref<4xf32, #tpu.memory_space<smem>>
    %353 = vector.broadcast %352 : f32 to vector<16x16xf32>
    %354 = arith.addf %351, %353 : vector<16x16xf32>
    %355 = math.tanh %354 : vector<16x16xf32>
    %c0_297 = arith.constant 0 : index
    %c1_298 = arith.constant 1 : index
    %356 = memref.load %arg10[%c0_297, %c1_298] : memref<4x4xf32, #tpu.memory_space<smem>>
    %357 = vector.broadcast %356 : f32 to vector<16x16xf32>
    %358 = arith.mulf %246, %357 : vector<16x16xf32>
    %c1_299 = arith.constant 1 : index
    %c1_300 = arith.constant 1 : index
    %359 = memref.load %arg10[%c1_299, %c1_300] : memref<4x4xf32, #tpu.memory_space<smem>>
    %360 = vector.broadcast %359 : f32 to vector<16x16xf32>
    %361 = arith.mulf %276, %360 : vector<16x16xf32>
    %362 = arith.addf %358, %361 : vector<16x16xf32>
    %c2_301 = arith.constant 2 : index
    %c1_302 = arith.constant 1 : index
    %363 = memref.load %arg10[%c2_301, %c1_302] : memref<4x4xf32, #tpu.memory_space<smem>>
    %364 = vector.broadcast %363 : f32 to vector<16x16xf32>
    %365 = arith.mulf %306, %364 : vector<16x16xf32>
    %366 = arith.addf %362, %365 : vector<16x16xf32>
    %c3_303 = arith.constant 3 : index
    %c1_304 = arith.constant 1 : index
    %367 = memref.load %arg10[%c3_303, %c1_304] : memref<4x4xf32, #tpu.memory_space<smem>>
    %368 = vector.broadcast %367 : f32 to vector<16x16xf32>
    %369 = arith.mulf %336, %368 : vector<16x16xf32>
    %370 = arith.addf %366, %369 : vector<16x16xf32>
    %c1_305 = arith.constant 1 : index
    %371 = memref.load %arg11[%c1_305] : memref<4xf32, #tpu.memory_space<smem>>
    %372 = vector.broadcast %371 : f32 to vector<16x16xf32>
    %373 = arith.addf %370, %372 : vector<16x16xf32>
    %374 = math.tanh %373 : vector<16x16xf32>
    %c0_306 = arith.constant 0 : index
    %c2_307 = arith.constant 2 : index
    %375 = memref.load %arg10[%c0_306, %c2_307] : memref<4x4xf32, #tpu.memory_space<smem>>
    %376 = vector.broadcast %375 : f32 to vector<16x16xf32>
    %377 = arith.mulf %246, %376 : vector<16x16xf32>
    %c1_308 = arith.constant 1 : index
    %c2_309 = arith.constant 2 : index
    %378 = memref.load %arg10[%c1_308, %c2_309] : memref<4x4xf32, #tpu.memory_space<smem>>
    %379 = vector.broadcast %378 : f32 to vector<16x16xf32>
    %380 = arith.mulf %276, %379 : vector<16x16xf32>
    %381 = arith.addf %377, %380 : vector<16x16xf32>
    %c2_310 = arith.constant 2 : index
    %c2_311 = arith.constant 2 : index
    %382 = memref.load %arg10[%c2_310, %c2_311] : memref<4x4xf32, #tpu.memory_space<smem>>
    %383 = vector.broadcast %382 : f32 to vector<16x16xf32>
    %384 = arith.mulf %306, %383 : vector<16x16xf32>
    %385 = arith.addf %381, %384 : vector<16x16xf32>
    %c3_312 = arith.constant 3 : index
    %c2_313 = arith.constant 2 : index
    %386 = memref.load %arg10[%c3_312, %c2_313] : memref<4x4xf32, #tpu.memory_space<smem>>
    %387 = vector.broadcast %386 : f32 to vector<16x16xf32>
    %388 = arith.mulf %336, %387 : vector<16x16xf32>
    %389 = arith.addf %385, %388 : vector<16x16xf32>
    %c2_314 = arith.constant 2 : index
    %390 = memref.load %arg11[%c2_314] : memref<4xf32, #tpu.memory_space<smem>>
    %391 = vector.broadcast %390 : f32 to vector<16x16xf32>
    %392 = arith.addf %389, %391 : vector<16x16xf32>
    %393 = math.tanh %392 : vector<16x16xf32>
    %c0_315 = arith.constant 0 : index
    %c3_316 = arith.constant 3 : index
    %394 = memref.load %arg10[%c0_315, %c3_316] : memref<4x4xf32, #tpu.memory_space<smem>>
    %395 = vector.broadcast %394 : f32 to vector<16x16xf32>
    %396 = arith.mulf %246, %395 : vector<16x16xf32>
    %c1_317 = arith.constant 1 : index
    %c3_318 = arith.constant 3 : index
    %397 = memref.load %arg10[%c1_317, %c3_318] : memref<4x4xf32, #tpu.memory_space<smem>>
    %398 = vector.broadcast %397 : f32 to vector<16x16xf32>
    %399 = arith.mulf %276, %398 : vector<16x16xf32>
    %400 = arith.addf %396, %399 : vector<16x16xf32>
    %c2_319 = arith.constant 2 : index
    %c3_320 = arith.constant 3 : index
    %401 = memref.load %arg10[%c2_319, %c3_320] : memref<4x4xf32, #tpu.memory_space<smem>>
    %402 = vector.broadcast %401 : f32 to vector<16x16xf32>
    %403 = arith.mulf %306, %402 : vector<16x16xf32>
    %404 = arith.addf %400, %403 : vector<16x16xf32>
    %c3_321 = arith.constant 3 : index
    %c3_322 = arith.constant 3 : index
    %405 = memref.load %arg10[%c3_321, %c3_322] : memref<4x4xf32, #tpu.memory_space<smem>>
    %406 = vector.broadcast %405 : f32 to vector<16x16xf32>
    %407 = arith.mulf %336, %406 : vector<16x16xf32>
    %408 = arith.addf %404, %407 : vector<16x16xf32>
    %c3_323 = arith.constant 3 : index
    %409 = memref.load %arg11[%c3_323] : memref<4xf32, #tpu.memory_space<smem>>
    %410 = vector.broadcast %409 : f32 to vector<16x16xf32>
    %411 = arith.addf %408, %410 : vector<16x16xf32>
    %412 = math.tanh %411 : vector<16x16xf32>
    %c0_324 = arith.constant 0 : index
    %c0_325 = arith.constant 0 : index
    %c0_326 = arith.constant 0 : index
    %c0_327 = arith.constant 0 : index
    %413 = vector.load %arg13[%c0_324, %c0_325, %c0_326, %c0_327] : memref<1x4x16x16xf32, #tpu.memory_space<vmem>>, vector<1x1x16x16xf32>
    %414 = vector.shape_cast %413 : vector<1x1x16x16xf32> to vector<16x16xf32>
    %415 = vector.shape_cast %213 : vector<16x16xf32> to vector<1x1x16x16xf32>
    tpu.vector_store %arg13[%c0_324, %c0_325, %c0_326, %c0_327], %415 {strides = array<i32>} : memref<1x4x16x16xf32, #tpu.memory_space<vmem>>, vector<1x1x16x16xf32>,
    %416 = arith.addf %2, %355 : vector<16x16xf32>
    %c0_328 = arith.constant 0 : index
    %c0_329 = arith.constant 0 : index
    %c0_330 = arith.constant 0 : index
    %c0_331 = arith.constant 0 : index
    %417 = vector.load %arg12[%c0_328, %c0_329, %c0_330, %c0_331] : memref<1x4x16x16xf32, #tpu.memory_space<vmem>>, vector<1x1x16x16xf32>
    %418 = vector.shape_cast %417 : vector<1x1x16x16xf32> to vector<16x16xf32>
    %419 = vector.shape_cast %416 : vector<16x16xf32> to vector<1x1x16x16xf32>
    tpu.vector_store %arg12[%c0_328, %c0_329, %c0_330, %c0_331], %419 {strides = array<i32>} : memref<1x4x16x16xf32, #tpu.memory_space<vmem>>, vector<1x1x16x16xf32>,
    %c0_332 = arith.constant 0 : index
    %c1_333 = arith.constant 1 : index
    %c0_334 = arith.constant 0 : index
    %c0_335 = arith.constant 0 : index
    %420 = vector.load %arg13[%c0_332, %c1_333, %c0_334, %c0_335] : memref<1x4x16x16xf32, #tpu.memory_space<vmem>>, vector<1x1x16x16xf32>
    %421 = vector.shape_cast %420 : vector<1x1x16x16xf32> to vector<16x16xf32>
    %422 = vector.shape_cast %214 : vector<16x16xf32> to vector<1x1x16x16xf32>
    tpu.vector_store %arg13[%c0_332, %c1_333, %c0_334, %c0_335], %422 {strides = array<i32>} : memref<1x4x16x16xf32, #tpu.memory_space<vmem>>, vector<1x1x16x16xf32>,
    %423 = arith.addf %4, %374 : vector<16x16xf32>
    %c0_336 = arith.constant 0 : index
    %c1_337 = arith.constant 1 : index
    %c0_338 = arith.constant 0 : index
    %c0_339 = arith.constant 0 : index
    %424 = vector.load %arg12[%c0_336, %c1_337, %c0_338, %c0_339] : memref<1x4x16x16xf32, #tpu.memory_space<vmem>>, vector<1x1x16x16xf32>
    %425 = vector.shape_cast %424 : vector<1x1x16x16xf32> to vector<16x16xf32>
    %426 = vector.shape_cast %423 : vector<16x16xf32> to vector<1x1x16x16xf32>
    tpu.vector_store %arg12[%c0_336, %c1_337, %c0_338, %c0_339], %426 {strides = array<i32>} : memref<1x4x16x16xf32, #tpu.memory_space<vmem>>, vector<1x1x16x16xf32>,
    %c0_340 = arith.constant 0 : index
    %c2_341 = arith.constant 2 : index
    %c0_342 = arith.constant 0 : index
    %c0_343 = arith.constant 0 : index
    %427 = vector.load %arg13[%c0_340, %c2_341, %c0_342, %c0_343] : memref<1x4x16x16xf32, #tpu.memory_space<vmem>>, vector<1x1x16x16xf32>
    %428 = vector.shape_cast %427 : vector<1x1x16x16xf32> to vector<16x16xf32>
    %429 = vector.shape_cast %215 : vector<16x16xf32> to vector<1x1x16x16xf32>
    tpu.vector_store %arg13[%c0_340, %c2_341, %c0_342, %c0_343], %429 {strides = array<i32>} : memref<1x4x16x16xf32, #tpu.memory_space<vmem>>, vector<1x1x16x16xf32>,
    %430 = arith.addf %6, %393 : vector<16x16xf32>
    %c0_344 = arith.constant 0 : index
    %c2_345 = arith.constant 2 : index
    %c0_346 = arith.constant 0 : index
    %c0_347 = arith.constant 0 : index
    %431 = vector.load %arg12[%c0_344, %c2_345, %c0_346, %c0_347] : memref<1x4x16x16xf32, #tpu.memory_space<vmem>>, vector<1x1x16x16xf32>
    %432 = vector.shape_cast %431 : vector<1x1x16x16xf32> to vector<16x16xf32>
    %433 = vector.shape_cast %430 : vector<16x16xf32> to vector<1x1x16x16xf32>
    tpu.vector_store %arg12[%c0_344, %c2_345, %c0_346, %c0_347], %433 {strides = array<i32>} : memref<1x4x16x16xf32, #tpu.memory_space<vmem>>, vector<1x1x16x16xf32>,
    %c0_348 = arith.constant 0 : index
    %c3_349 = arith.constant 3 : index
    %c0_350 = arith.constant 0 : index
    %c0_351 = arith.constant 0 : index
    %434 = vector.load %arg13[%c0_348, %c3_349, %c0_350, %c0_351] : memref<1x4x16x16xf32, #tpu.memory_space<vmem>>, vector<1x1x16x16xf32>
    %435 = vector.shape_cast %434 : vector<1x1x16x16xf32> to vector<16x16xf32>
    %436 = vector.shape_cast %216 : vector<16x16xf32> to vector<1x1x16x16xf32>
    tpu.vector_store %arg13[%c0_348, %c3_349, %c0_350, %c0_351], %436 {strides = array<i32>} : memref<1x4x16x16xf32, #tpu.memory_space<vmem>>, vector<1x1x16x16xf32>,
    %437 = arith.addf %8, %412 : vector<16x16xf32>
    %c0_352 = arith.constant 0 : index
    %c3_353 = arith.constant 3 : index
    %c0_354 = arith.constant 0 : index
    %c0_355 = arith.constant 0 : index
    %438 = vector.load %arg12[%c0_352, %c3_353, %c0_354, %c0_355] : memref<1x4x16x16xf32, #tpu.memory_space<vmem>>, vector<1x1x16x16xf32>
    %439 = vector.shape_cast %438 : vector<1x1x16x16xf32> to vector<16x16xf32>
    %440 = vector.shape_cast %437 : vector<16x16xf32> to vector<1x1x16x16xf32>
    tpu.vector_store %arg12[%c0_352, %c3_353, %c0_354, %c0_355], %440 {strides = array<i32>} : memref<1x4x16x16xf32, #tpu.memory_space<vmem>>, vector<1x1x16x16xf32>,
    return
  }
  func.func @transform_0(%arg0: i32) -> (i32, i32, i32, i32) {
    %c0_i32 = arith.constant 0 : i32
    %c0_i32_0 = arith.constant 0 : i32
    %c0_i32_1 = arith.constant 0 : i32
    %c0_i32_2 = arith.constant 0 : i32
    return %arg0, %c0_i32, %c0_i32_0, %c0_i32_1 : i32, i32, i32, i32
  }
  func.func @transform_1(%arg0: i32) -> (i32, i32, i32, i32) {
    %c0_i32 = arith.constant 0 : i32
    %c0_i32_0 = arith.constant 0 : i32
    %c0_i32_1 = arith.constant 0 : i32
    %c0_i32_2 = arith.constant 0 : i32
    return %arg0, %c0_i32, %c0_i32_0, %c0_i32_1 : i32, i32, i32, i32
  }
  func.func @transform_2(%arg0: i32) -> (i32, i32) {
    %c0_i32 = arith.constant 0 : i32
    %c0_i32_0 = arith.constant 0 : i32
    %c0_i32_1 = arith.constant 0 : i32
    return %c0_i32, %c0_i32_0 : i32, i32
  }
  func.func @transform_3(%arg0: i32) -> (i32, i32, i32, i32) {
    %c0_i32 = arith.constant 0 : i32
    %c0_i32_0 = arith.constant 0 : i32
    %c0_i32_1 = arith.constant 0 : i32
    %c0_i32_2 = arith.constant 0 : i32
    %c0_i32_3 = arith.constant 0 : i32
    return %c0_i32, %c0_i32_0, %c0_i32_1, %c0_i32_2 : i32, i32, i32, i32
  }
  func.func @transform_4(%arg0: i32) -> i32 {
    %c0_i32 = arith.constant 0 : i32
    %c0_i32_0 = arith.constant 0 : i32
    return %c0_i32 : i32
  }
  func.func @transform_5(%arg0: i32) -> (i32, i32) {
    %c0_i32 = arith.constant 0 : i32
    %c0_i32_0 = arith.constant 0 : i32
    %c0_i32_1 = arith.constant 0 : i32
    return %c0_i32, %c0_i32_0 : i32, i32
  }
  func.func @transform_6(%arg0: i32) -> i32 {
    %c0_i32 = arith.constant 0 : i32
    %c0_i32_0 = arith.constant 0 : i32
    return %c0_i32 : i32
  }
  func.func @transform_7(%arg0: i32) -> (i32, i32, i32, i32) {
    %c0_i32 = arith.constant 0 : i32
    %c0_i32_0 = arith.constant 0 : i32
    %c0_i32_1 = arith.constant 0 : i32
    %c0_i32_2 = arith.constant 0 : i32
    %c0_i32_3 = arith.constant 0 : i32
    return %c0_i32, %c0_i32_0, %c0_i32_1, %c0_i32_2 : i32, i32, i32, i32
  }
  func.func @transform_8(%arg0: i32) -> i32 {
    %c0_i32 = arith.constant 0 : i32
    %c0_i32_0 = arith.constant 0 : i32
    return %c0_i32 : i32
  }
  func.func @transform_9(%arg0: i32) -> (i32, i32) {
    %c0_i32 = arith.constant 0 : i32
    %c0_i32_0 = arith.constant 0 : i32
    %c0_i32_1 = arith.constant 0 : i32
    return %c0_i32, %c0_i32_0 : i32, i32
  }
  func.func @transform_10(%arg0: i32) -> i32 {
    %c0_i32 = arith.constant 0 : i32
    %c0_i32_0 = arith.constant 0 : i32
    return %c0_i32 : i32
  }
  func.func @transform_11(%arg0: i32) -> (i32, i32, i32, i32) {
    %c0_i32 = arith.constant 0 : i32
    %c0_i32_0 = arith.constant 0 : i32
    %c0_i32_1 = arith.constant 0 : i32
    %c0_i32_2 = arith.constant 0 : i32
    return %arg0, %c0_i32, %c0_i32_0, %c0_i32_1 : i32, i32, i32, i32
  }
  func.func @transform_12(%arg0: i32) -> (i32, i32, i32, i32) {
    %c0_i32 = arith.constant 0 : i32
    %c0_i32_0 = arith.constant 0 : i32
    %c0_i32_1 = arith.constant 0 : i32
    %c0_i32_2 = arith.constant 0 : i32
    return %arg0, %c0_i32, %c0_i32_0, %c0_i32_1 : i32, i32, i32, i32
  }
}

</mosaic_0001>

<bundles_post_ra>
// kernel: pu_forward.1
= control target key start
LH: loop header
LB: loop body
LE: loop exit
PB: predicated region body
PF: predicated region fallthrough
CT: control target
= control target key end

     0   :  { %s4601_s0 = inlined_call_operand.vmem [shape: f32[2,4,16,16], index: 0, kind: input, shape index: {}]   ;;  %s4602_s1 = inlined_call_operand.vmem [shape: f32[2,4,16,16], index: 1, kind: input, shape index: {}]   ;;  %s4603_s2 = inlined_call_operand.vmem [shape: f32[80,16], index: 2, kind: input, shape index: {}]   ;;  %s4604_s3 = inlined_call_operand.vmem [shape: f32[4,5,16,16], index: 3, kind: input, shape index: {}]   ;;  %s4605_s4 = inlined_call_operand.vmem [shape: f32[4], index: 4, kind: input, shape index: {}]   ;;  %s4606_s5 = inlined_call_operand.vmem [shape: f32[4,4], index: 5, kind: input, shape index: {}]   ;;  %s4607_s6 = inlined_call_operand.vmem [shape: f32[4], index: 6, kind: input, shape index: {}]   ;;  %s4608_s7 = inlined_call_operand.vmem [shape: f32[4,5,16,16], index: 7, kind: input, shape index: {}]   ;;  %s4609_s8 = inlined_call_operand.vmem [shape: f32[4], index: 8, kind: input, shape index: {}]   ;;  %s4610_s9 = inlined_call_operand.vmem [shape: f32[4,4], index: 9, kind: input, shape index: {}]   ;;  %s4611_s10 = inlined_call_operand.vmem [shape: f32[4], index: 10, kind: input, shape index: {}]   ;;  %s4612_s11 = inlined_call_operand.hbm [shape: f32[2,4,16,16], index: 11, kind: output, shape index: {0}]   ;;  %s4613_s12 = inlined_call_operand.hbm [shape: f32[2,4,16,16], index: 12, kind: output, shape index: {1}]  }
   0x1   :  { %4619 = sst [smem:[#allocation25_spill]] %s4601_s0 }
   0x2   :  { %4620 = sst [smem:[#allocation26_spill]] %s4602_s1 }
   0x3   :  { %4621 = sst [smem:[#allocation27_spill]] %s4603_s2 }
   0x4   :  { %4622 = sst [smem:[#allocation28_spill]] %s4605_s4 }
   0x5   :  { %4623 = sst [smem:[#allocation29_spill]] %s4606_s5 }
   0x6   :  { %4624 = sst [smem:[#allocation30_spill]] %s4607_s6 }
   0x7   :  { %4625 = sst [smem:[#allocation31_spill]] %s4609_s8 }
   0x8   :  { %18 = vsyncpa [#allocation4], 0 }
   0x9   :  { %19 = vsyncpa [#allocation6], 0 }
   0xa   :  { %20 = vsyncpa [#allocation9], 0 }
   0xb   :  { %21 = vsyncpa [#allocation12], 0 }
   0xc   :  { %22 = vsyncpa [#allocation3], 0 }
   0xd   :  { %24 = vsyncpa [#allocation3 + $0x1], 0 }
   0xe   :  { %25 = vsyncpa [#allocation15], 0 }
   0xf   :  { %27 = vsyncpa [#allocation15 + $0x1], 0  ;;  %s3566_s21 = smov 0   ;;  %s3568_s22 = smov 0  }
  0x10   :  { %s3570_s23 = smov 0   ;;  %s3572_s24 = smov 0  }
  0x11 LB: > { %4626 = sst [smem:[#allocation22_spill]] %s3487_s23  ;;  %s3587_s25 = sadd.s32 4294967295, %s3491_s24   ;;  %s3491_s24 = sphi %s3572_s24, %s4642_s24   ;;  %s3487_s23 = sphi %s3570_s23, %s4644_s23   ;;  %s3483_s22 = sphi %s3568_s22, %s4646_s22   ;;  %s3479_s21 = sphi %s3566_s21, %s4645_s21  }
  0x12   : > { %s2800_s26 = sadd.s32 4294967294, %s3491_s24   ;;  %s3591_s27 = sadd.s32 1, %s3491_s24  }
  0x13   : > { %4627 = sst [smem:[#allocation23_spill]] %s3591_s27  ;;  %s281_s28 = sadd.s32 1, %s3487_s23 }
  0x14   : > { %s278_s29 = ssub.s32 %s3491_s24, %s3591_s27  ;;  %p291_p0 = scmp.ne.s32.totalorder %s3487_s23, %s3483_s22 }
  0x15   : > { %p279_p1 = scmp.eq.s32.totalorder %s278_s29, 0  ;;  %p292_p2 = scmp.eq.s32.totalorder %s3587_s25, 1 }
  0x16   : > { %p297_p3 = scmp.ne.s32.totalorder %s3483_s22, %s3479_s21  ;;  %p298_p4 = scmp.eq.s32.totalorder %s2800_s26, 1 }
  0x17   : > { %s3602_s30 = scalar_select %p279_p1, %s3487_s23, %s281_s28  }
  0x18   : > { %p3604_p5 = por %p292_p2, %p291_p0  ;;  %p3608_p6 = por %p298_p4, %p297_p3 }
  0x19   : > { %4628 = sst [smem:[#allocation24_spill]] %s3602_s30  ;;  %p2801_p7 = scmp.ge.s32.totalorder %s3491_s24, 1 }
  0x1a   : > { %p331_p8 = scmp.lt.s32.totalorder %s3491_s24, 3  ;;  %p3194_p9 = scmp.eq.s32.totalorder %s3587_s25, 0 }
  0x1b   : > { %s4632_s5 = sld [smem:[#allocation29_spill]]  ;;  %s3493_s20 = smov [#allocation5]  }
  0x1c   : > { %p3615_p10 = pnand %p2801_p7, %p331_p8  ;;  %s4633_s8 = sld [smem:[#allocation31_spill]] }
  0x1d   : > { %s4635_s4 = sld [smem:[#allocation28_spill]]  ;;  %s3495_s23 = smov [#allocation2]  }
  0x1e   : > { %p3168_p11 = pneg %p3615_p10  ;;  %s4636_s6 = sld [smem:[#allocation30_spill]] }
  0x1f   : > { %s3496_s30 = smov [#allocation7]   ;;  %s392_s27 = sshll.u32 %s4610_s9, 4  ;;  %s393_s27 = int_to_ptr.vmem [resolvable:$true] %s392_s27 }
  0x20   : > { %p3629_p12 = pnand %p3194_p9, %p3168_p11 }
  0x21   : > { %s359_s18 = sshll.u32 %s4632_s5, 4  ;;  %s360_s18 = int_to_ptr.vmem [resolvable:$true] %s359_s18 }
  0x22   : > { %s382_s26 = sshll.u32 %s4633_s8, 4  ;;  %s3494_s8 = smov [#allocation8]   ;;  %s383_s26 = int_to_ptr.vmem [resolvable:$true] %s382_s26 }
  0x23   : > { %s349_s16 = sshll.u32 %s4635_s4, 4  ;;  %s350_s16 = int_to_ptr.vmem [resolvable:$true] %s349_s16 }
  0x24   : > { %s369_s19 = sshll.u32 %s4636_s6, 4  ;;  %s402_s6 = sshll.u32 %s4611_s10, 4  ;;  %s370_s19 = int_to_ptr.vmem [resolvable:$true] %s369_s19  ;;  %s403_s6 = int_to_ptr.vmem [resolvable:$true] %s402_s6 }
  0x25   : > { %3174 = dma.vmem_to_smem (!%p3629_p12), %s360_s18, 64, %s3493_s20, [#allocation6]  }
  0x26   : > { %3180 = dma.vmem_to_smem (!%p3629_p12), %s383_s26, 16, %s3494_s8, [#allocation9]  }
  0x27   : > { %3171 = dma.vmem_to_smem (!%p3629_p12), %s350_s16, 16, %s3495_s23, [#allocation4]  }
  0x28   : > { %3177 = dma.vmem_to_smem (!%p3629_p12), %s370_s19, 16, %s3496_s30, [#allocation6]  }
  0x29   : > { %s3497_s18 = smov [#allocation10]   ;;  %s3498_s8 = smov [#allocation11]  }
  0x2a   : > { %3183 = dma.vmem_to_smem (!%p3629_p12), %s393_s27, 64, %s3497_s18, [#allocation9]  }
  0x2b   : > { %3186 = dma.vmem_to_smem (!%p3629_p12), %s403_s6, 16, %s3498_s8, [#allocation12]  }
  0x2c   : > { %431 = sbr.rel (%p3615_p10) target bundleno = 1446 (0x5a6), region = 64 }
  0x31   : > { %3454 = dma.done.wait (%p3194_p9), [#allocation4], 16  }
  0x32   : > { %3456 = vsyncadd (%p3194_p9), [#allocation4], 4294967280 }
  0x33   : > { %3458 = dma.done.wait (%p3194_p9), [#allocation6], 80  }
  0x34   : > { %3460 = vsyncadd (%p3194_p9), [#allocation6], 4294967216 }
  0x35   : > { %3462 = dma.done.wait (%p3194_p9), [#allocation9], 80  }
  0x36   : > { %3464 = vsyncadd (%p3194_p9), [#allocation9], 4294967216 }
  0x37   : > { %3466 = dma.done.wait (%p3194_p9), [#allocation12], 16  }
  0x38   : > { %3468 = vsyncadd (%p3194_p9), [#allocation12], 4294967280 }
  0x39   : > { %463 = sfence }
  0x3a   : > { %p510_p13 = scmp.lt.s32.totalorder %s3587_s25, 1  ;;  %s4637_s1 = sld [smem:[#allocation26_spill]]  ;;  %vm552_vm0 = vcmask 130048   ;;  %v631_v8 = vld [vmem:[%s4604_s3 + $0x8] sm:$0xff]  ;;  %v630_v13 = vld [vmem:[%s4604_s3] sm:$0xff]  ;;  %v2845_v14 = vld [vmem:[%s4604_s3 + $0x18] sm:$0xff] }
  0x3b   : > { %s4638_s2 = sld [smem:[#allocation27_spill]]  ;;  %655 = vmatpush.msra.mxu1 %v2845_v14  ;;  %v2844_v15 = vld [vmem:[%s4604_s3 + $0x10] sm:$0xff]  ;;  %v2851_v16 = vld [vmem:[%s4604_s3 + $0x28] sm:$0xff]  ;;  %v2850_v17 = vld [vmem:[%s4604_s3 + $0x20] sm:$0xff] }
  0x3c   : > { %s3677_s4 = scalar_select %p510_p13, %s3587_s25, 1  ;;  %v2859_v19 = vld [vmem:[%s4604_s3 + $0x48] sm:$0xff]  ;;  %v2858_v20 = vld [vmem:[%s4604_s3 + $0x40] sm:$0xff]  ;;  %v2855_v21 = vld [vmem:[%s4604_s3 + $0x38] sm:$0xff] }
  0x3d   : > { %656 = vmatpush.msra.mxu1 %v2844_v15  ;;  %v2854_v22 = vld [vmem:[%s4604_s3 + $0x30] sm:$0xff]  ;;  %v2873_v34 = vld [vmem:[%s4604_s3 + $0x58] sm:$0xff]  ;;  %v2875_v36 = vld [vmem:[%s4604_s3 + $0x68] sm:$0xff]  ;;  %s795_s18 = sld [smem:[#allocation2]] }
  0x3e   : > { %s3132_s6 = sshll.u32 %s3677_s4, 6  ;;  %v2872_v35 = vld [vmem:[%s4604_s3 + $0x50] sm:$0xff]  ;;  %v2874_v38 = vld [vmem:[%s4604_s3 + $0x60] sm:$0xff]  ;;  %v2881_v40 = vld [vmem:[%s4604_s3 + $0x78] sm:$0xff]  ;;  %s4023_s8 = sld [smem:[#allocation2 + $0x1]] }
  0x3f   : > { %750 = vmatpush.msrb.mxu1 %v2855_v21  ;;  %v2880_v42 = vld [vmem:[%s4604_s3 + $0x70] sm:$0xff]  ;;  %v2885_v44 = vld [vmem:[%s4604_s3 + $0x88] sm:$0xff]  ;;  %v2884_v46 = vld [vmem:[%s4604_s3 + $0x80] sm:$0xff]  ;;  %s4027_s23 = sld [smem:[#allocation5]] }
  0x40   : > { %s3685_s15 = scalar_lea.vmem %s4637_s1, %s3132_s6  ;;  %v2889_v48 = vld [vmem:[%s4604_s3 + $0x98] sm:$0xff]  ;;  %v2888_v51 = vld [vmem:[%s4604_s3 + $0x90] sm:$0xff]  ;;  %v2904_v63 = vld [vmem:[%s4604_s3 + $0xa8] sm:$0xff]  ;;  %s4030_s27 = sld [smem:[#allocation5 + $0x1]] }
  0x41   : > { %v531_v0 = vld [vmem:[%s3685_s15 + $0x8] sm:$0xff]  ;;  %v530_v1 = vld [vmem:[%s3685_s15] sm:$0xff]  ;;  %v3706_v4 = vld [vmem:[%s4638_s2 + $0x30] sm:$0xff]  ;;  %751 = vmatpush.msrb.mxu1 %v2854_v22  ;;  %s4033_s26 = sld [smem:[#allocation5 + $0x2]] }
  0x42   : > { %597 = vmatpush.msra.mxu0 %v531_v0  ;;  %v3692_v2 = vld [vmem:[%s4638_s2] sm:$0xff]  ;;  %3137 = vmatpush.msra.mxu3 %v531_v0  ;;  %v3713_v5 = vld [vmem:[%s4638_s2 + $0x8] sm:$0xff]  ;;  %v3727_v7 = vld [vmem:[%s4638_s2 + $0x38] sm:$0xff]  ;;  %s4035_s28 = sld [smem:[#allocation5 + $0x3]] }
  0x43   : > { %v3697_v3 = vld [vmem:[%s4638_s2 + $0x40] sm:$0xff]  ;;  %3136 = vmatpush.msra.mxu2 %v531_v0  ;;  %v3718_v6 = vld [vmem:[%s4638_s2 + $0x48] sm:$0xff]  ;;  %v3737_v9 = vld [vmem:[%s4638_s2 + $0x10] sm:$0xff]  ;;  %s4038_s16 = sld [smem:[#allocation2 + $0x2]] }
  0x44   : > { %598 = vmatpush.msra.mxu0 %v530_v1  ;;  %3139 = vmatpush.msra.mxu3 %v530_v1  ;;  %v3744_v10 = vld [vmem:[%s4638_s2 + $0x18] sm:$0xff]  ;;  %v3751_v11 = vld [vmem:[%s4638_s2 + $0x20] sm:$0xff]  ;;  %v3758_v12 = vld [vmem:[%s4638_s2 + $0x28] sm:$0xff]  ;;  %s4041_s19 = sld [smem:[#allocation5 + $0x80]] }
  0x45   : > { %2834 = vmatmul.msk.f32.vlgmr.msra.gmra.mxu0 %vm552_vm0, %v3692_v2  ;;  %2842 = vmatmul.msk.f32.vlgmr.msra.gmra.mxu3 %vm552_vm0, %v3697_v3  ;;  %v2823_v24 = vld [vmem:[%s3685_s15 + $0x18] sm:$0xff]  ;;  %v2822_v25 = vld [vmem:[%s3685_s15 + $0x10] sm:$0xff]  ;;  %v2825_v49 = vld [vmem:[%s3685_s15 + $0x28] sm:$0xff]  ;;  %s4045_s20 = sld [smem:[#allocation5 + $0x81]] }
  0x46   : > { %3138 = vmatpush.msra.mxu2 %v530_v1  ;;  %716 = vmatpush.msrb.mxu3 %v2851_v16  ;;  %v2824_v52 = vld [vmem:[%s3685_s15 + $0x20] sm:$0xff]  ;;  %v2905_v14 = vld [vmem:[%s4604_s3 + $0xb0] sm:$0xff]  ;;  %v2912_v16 = vld [vmem:[%s4604_s3 + $0xc8] sm:$0xff]  ;;  %s4048_s30 = sld [smem:[#allocation5 + $0x82]] }
  0x47   : > { %2840 = vmatmul.msk.f32.vlgmr.msra.gmra.mxu2 %vm552_vm0, %v3706_v4  ;;  %v2903_v0 = vld [vmem:[%s4604_s3 + $0xa0] sm:$0xff]  ;;  %v2827_v21 = vld [vmem:[%s3685_s15 + $0x38] sm:$0xff]  ;;  %s4051_s29 = sld [smem:[#allocation5 + $0x83]] }
  0x48   : > { %684 = vmatpush.msrb.mxu2 %v631_v8  ;;  %717 = vmatpush.msrb.mxu3 %v2850_v17  ;;  %v2906_v8 = vld [vmem:[%s4604_s3 + $0xb8] sm:$0xff]  ;;  %s4057_s5 = sld [smem:[#allocation5 + $0x100]] }
  0x49   : > { %1093 = vmatpush.msrb.mxu0 %v2906_v8  ;;  %s4060_s17 = sld [smem:[#allocation5 + $0x101]] }
  0x4a   : > { %685 = vmatpush.msrb.mxu2 %v630_v13  ;;  %815 = vmatpush.msra.mxu3 %v2823_v24  ;;  %v2826_v24 = vld [vmem:[%s3685_s15 + $0x30] sm:$0xff]  ;;  %s4639_s0 = sld [smem:[#allocation25_spill]] }
  0x4b   : > { %1094 = vmatpush.msrb.mxu0 %v2905_v14 }
  0x4c   : > { %784 = vmatpush.msra.mxu2 %v2859_v19  ;;  %816 = vmatpush.msra.mxu3 %v2822_v25 }
  0x4d   : > { %2835 = vmatmul.msk.f32.gmra.mxu0 %vm552_vm0, %v3713_v5  ;;  %2843 = vmatmul.msk.f32.gmra.mxu3 %vm552_vm0, %v3718_v6 }
  0x4e   : > { %785 = vmatpush.msra.mxu2 %v2858_v20  ;;  %1154 = vmatpush.msra.mxu0 %v2912_v16  ;;  %v2916_v20 = vld [vmem:[%s4604_s3 + $0xd8] sm:$0xff] }
  0x4f   : > { %2841 = vmatmul.msk.f32.gmra.mxu2 %vm552_vm0, %v3727_v7 }
  0x55   : > { %2836 = vmatmul.msk.f32.gmra.mxu0 %vm552_vm0, %v3737_v9 }
  0x5d   : > { %2837 = vmatmul.msk.f32.gmra.mxu0 %vm552_vm0, %v3744_v10 }
  0x65   : > { %2838 = vmatmul.msk.f32.gmra.mxu0 %vm552_vm0, %v3751_v11 }
  0x6d   : > { %2839 = vmatmul.msk.f32.gmra.mxu0 %vm552_vm0, %v3758_v12 }
  0xc2   : > { %v600_v18 = vpop.f32.mrf.mxu0 }
  0xc3   : > { %2848 = vmatmul.msk.f32.vlgmr.msrb.gmra.mxu2 %vm552_vm0, %v600_v18  ;;  %v2911_v18 = vld [vmem:[%s4604_s3 + $0xc0] sm:$0xff] }
  0xc4   : > { %903 = vmatpush.msrb.mxu2 %v2873_v34  ;;  %1155 = vmatpush.msra.mxu0 %v2911_v18  ;;  %v2935_v34 = vld [vmem:[%s4604_s3 + $0xf8] sm:$0xff] }
  0xc6   : > { %904 = vmatpush.msrb.mxu2 %v2872_v35 }
  0xc8   : > { %v624_v26 = vpop.f32.mrf.mxu3 }
  0xca   : > { %v603_v23 = vpop.f32.mrf.mxu0  ;;  %v618_v30 = vpop.f32.mrf.mxu2 }
  0xcb   : > { %2849 = vmatmul.msk.f32.gmra.mxu2 %vm552_vm0, %v603_v23  ;;  %v2915_v23 = vld [vmem:[%s4604_s3 + $0xd0] sm:$0xff] }
  0xd0   : > { %v627_v28 = vpop.f32.mrf.mxu3 }
  0xd2   : > { %v606_v27 = vpop.f32.mrf.mxu0  ;;  %v621_v32 = vpop.f32.mrf.mxu2 }
  0xd3   : > { %2846 = vmatmul.msk.f32.vlgmr.msra.gmra.mxu1 %vm552_vm0, %v606_v27  ;;  %2860 = vmatmul.msk.f32.vlgmr.msra.gmra.mxu2 %vm552_vm0, %v624_v26  ;;  %v2920_v26 = vld [vmem:[%s4604_s3 + $0xe8] sm:$0xff] }
  0xd4   : > { %874 = vmatpush.msra.mxu1 %v2875_v36  ;;  %969 = vmatpush.msra.mxu2 %v2885_v44  ;;  %v2934_v36 = vld [vmem:[%s4604_s3 + $0xf0] sm:$0xff]  ;;  %v2943_v44 = vld [vmem:[%s4604_s3 + $0x118] sm:$0xff] }
  0xd6   : > { %875 = vmatpush.msra.mxu1 %v2874_v38  ;;  %970 = vmatpush.msra.mxu2 %v2884_v46  ;;  %v2942_v46 = vld [vmem:[%s4604_s3 + $0x110] sm:$0xff] }
  0xda   : > { %v609_v29 = vpop.f32.mrf.mxu0 }
  0xdb   : > { %2847 = vmatmul.msk.f32.gmra.mxu1 %vm552_vm0, %v609_v29  ;;  %2861 = vmatmul.msk.f32.gmra.mxu2 %vm552_vm0, %v627_v28  ;;  %v2919_v28 = vld [vmem:[%s4604_s3 + $0xe0] sm:$0xff] }
  0xe2   : > { %v612_v31 = vpop.f32.mrf.mxu0 }
  0xe3   : > { %2852 = vmatmul.msk.f32.vlgmr.msrb.gmra.mxu3 %vm552_vm0, %v612_v31  ;;  %2856 = vmatmul.msk.f32.vlgmr.msrb.gmra.mxu1 %vm552_vm0, %v618_v30 }
  0xe4   : > { %935 = vmatpush.msrb.mxu1 %v2881_v40  ;;  %1222 = vmatpush.msrb.mxu3 %v2920_v26  ;;  %v2937_v40 = vld [vmem:[%s4604_s3 + $0x108] sm:$0xff] }
  0xe6   : > { %936 = vmatpush.msrb.mxu1 %v2880_v42  ;;  %1223 = vmatpush.msrb.mxu3 %v2919_v28  ;;  %v2936_v42 = vld [vmem:[%s4604_s3 + $0x100] sm:$0xff] }
  0xea   : > { %v615_v33 = vpop.f32.mrf.mxu0 }
  0xeb   : > { %2853 = vmatmul.msk.f32.gmra.mxu3 %vm552_vm0, %v615_v33  ;;  %2857 = vmatmul.msk.f32.gmra.mxu1 %vm552_vm0, %v621_v32 }
  0xf3   : > { %2862 = vmatmul.msk.f32.vlgmr.msra.gmra.mxu3 %vm552_vm0, %v3692_v2 }
  0xf4   : > { %1341 = vmatpush.msra.mxu3 %v2935_v34 }
  0xf6   : > { %1342 = vmatpush.msra.mxu3 %v2934_v36 }
  0xfb   : > { %2863 = vmatmul.msk.f32.gmra.mxu3 %vm552_vm0, %v3713_v5 }
 0x103   : > { %2864 = vmatmul.msk.f32.gmra.mxu3 %vm552_vm0, %v3737_v9 }
 0x10b   : > { %2865 = vmatmul.msk.f32.gmra.mxu3 %vm552_vm0, %v3744_v10 }
 0x113   : > { %2866 = vmatmul.msk.f32.gmra.mxu3 %vm552_vm0, %v3751_v11 }
 0x11b   : > { %2867 = vmatmul.msk.f32.gmra.mxu3 %vm552_vm0, %v3758_v12 }
 0x123   : > { %2868 = vmatmul.msk.f32.gmra.mxu3 %vm552_vm0, %v3706_v4 }
 0x12b   : > { %2869 = vmatmul.msk.f32.gmra.mxu3 %vm552_vm0, %v3727_v7 }
 0x133   : > { %2870 = vmatmul.msk.f32.gmra.mxu3 %vm552_vm0, %v3697_v3 }
 0x13b   : > { %2871 = vmatmul.msk.f32.gmra.mxu3 %vm552_vm0, %v3718_v6 }
 0x146   : > { %v3883_v58 = vpop.f32.mrf.mxu2 }
 0x14e   : > { %v3887_v59 = vpop.f32.mrf.mxu2 }
 0x156   : > { %v3891_v60 = vpop.f32.mrf.mxu2 }
 0x15e   : > { %v3893_v61 = vpop.f32.mrf.mxu2 }
 0x166   : > { %v3830_v37 = vpop.f32.mrf.mxu3 }
 0x16e   : > { %v3835_v39 = vpop.f32.mrf.mxu3 }
 0x176   : > { %v818_v41 = vpop.f32.mrf.mxu3 }
 0x177   : > { %2878 = vmatmul.msk.f32.vlgmr.msrb.gmra.mxu2 %vm552_vm0, %v818_v41 }
 0x178   : > { %1034 = vmatpush.msrb.mxu2 %v2825_v49 }
 0x17a   : > { %1035 = vmatpush.msrb.mxu2 %v2824_v52 }
 0x17e   : > { %v821_v43 = vpop.f32.mrf.mxu3 }
 0x17f   : > { %2879 = vmatmul.msk.f32.gmra.mxu2 %vm552_vm0, %v821_v43 }
 0x186   : > { %v824_v45 = vpop.f32.mrf.mxu3 }
 0x187   : > { %2876 = vmatmul.msk.f32.vlgmr.msra.gmra.mxu1 %vm552_vm0, %v824_v45 }
 0x188   : > { %1003 = vmatpush.msra.mxu1 %v2889_v48  ;;  %v2947_v48 = vld [vmem:[%s4604_s3 + $0x128] sm:$0xff] }
 0x18a   : > { %1004 = vmatpush.msra.mxu1 %v2888_v51  ;;  %v658_v51 = vpop.f32.mrf.mxu1 }
 0x18e   : > { %v827_v47 = vpop.f32.mrf.mxu3 }
 0x18f   : > { %2877 = vmatmul.msk.f32.gmra.mxu1 %vm552_vm0, %v827_v47 }
 0x196   : > { %v830_v50 = vpop.f32.mrf.mxu3 }
 0x197   : > { %2882 = vmatmul.msk.f32.vlgmr.msrb.gmra.mxu1 %vm552_vm0, %v830_v50  ;;  %v2946_v50 = vld [vmem:[%s4604_s3 + $0x120] sm:$0xff] }
 0x198   : > { %1122 = vmatpush.msrb.mxu1 %v2904_v63 }
 0x19a   : > { %1123 = vmatpush.msrb.mxu1 %v2903_v0 }
 0x19e   : > { %v833_v53 = vpop.f32.mrf.mxu3 }
 0x19f   : > { %2883 = vmatmul.msk.f32.gmra.mxu1 %vm552_vm0, %v833_v53  ;;  %v2951_v53 = vld [vmem:[%s4604_s3 + $0x138] sm:$0xff] }
 0x1a6   : > { %v836_v54 = vpop.f32.mrf.mxu3 }
 0x1a7   : > { %2886 = vmatmul.msk.f32.vlgmr.msra.gmra.mxu2 %vm552_vm0, %v836_v54 }
 0x1ae   : > { %v839_v55 = vpop.f32.mrf.mxu3 }
 0x1af   : > { %2887 = vmatmul.msk.f32.gmra.mxu2 %vm552_vm0, %v839_v55  ;;  %v2950_v55 = vld [vmem:[%s4604_s3 + $0x130] sm:$0xff] }
 0x1b6   : > { %v842_v56 = vpop.f32.mrf.mxu3 }
 0x1b7   : > { %2890 = vmatmul.msk.f32.vlgmr.msra.gmra.mxu1 %vm552_vm0, %v842_v56  ;;  %2893 = vmatmul.msk.f32.vlgmr.msrb.gmra.mxu2 %vm552_vm0, %v3692_v2  ;;  %v661_v56 = vpop.f32.mrf.mxu1 }
 0x1b8   : > { %1188 = vmatpush.msra.mxu1 %v2916_v20  ;;  %v691_v34 = vadd.f32 %v3887_v59, %v661_v56 }
 0x1ba   : > { %1189 = vmatpush.msra.mxu1 %v2915_v23  ;;  %v726_v36 = vadd.f32 %v3835_v39, %v691_v34 }
 0x1be   : > { %v845_v57 = vpop.f32.mrf.mxu3 }
 0x1bf   : > { %2891 = vmatmul.msk.f32.gmra.mxu1 %vm552_vm0, %v845_v57  ;;  %2894 = vmatmul.msk.f32.gmra.mxu2 %vm552_vm0, %v3713_v5  ;;  %v753_v63 = vpop.f32.mrf.mxu1 }
 0x1c7   : > { %2895 = vmatmul.msk.f32.gmra.mxu2 %vm552_vm0, %v3737_v9  ;;  %v756_v8 = vpop.f32.mrf.mxu1 }
 0x1cf   : > { %2896 = vmatmul.msk.f32.gmra.mxu2 %vm552_vm0, %v3744_v10 }
 0x1d7   : > { %2897 = vmatmul.msk.f32.gmra.mxu2 %vm552_vm0, %v3751_v11 }
 0x1df   : > { %2898 = vmatmul.msk.f32.gmra.mxu2 %vm552_vm0, %v3758_v12 }
 0x1e7   : > { %2899 = vmatmul.msk.f32.gmra.mxu2 %vm552_vm0, %v3706_v4 }
 0x1ef   : > { %2900 = vmatmul.msk.f32.gmra.mxu2 %vm552_vm0, %v3727_v7 }
 0x1f7   : > { %2901 = vmatmul.msk.f32.gmra.mxu2 %vm552_vm0, %v3697_v3 }
 0x1fa   : > { %v3895_v62 = vpop.f32.mrf.mxu2 }
 0x1ff   : > { %2902 = vmatmul.msk.f32.gmra.mxu2 %vm552_vm0, %v3718_v6 }
 0x202   : > { %v3903_v1 = vpop.f32.mrf.mxu2 }
 0x204   : > { %v877_v16 = vpop.f32.mrf.mxu1 }
 0x20c   : > { %v880_v18 = vpop.f32.mrf.mxu1 }
 0x214   : > { %v938_v20 = vpop.f32.mrf.mxu1 }
 0x22a   : > { %v3908_v13 = vpop.f32.mrf.mxu2 }
 0x232   : > { %v3913_v15 = vpop.f32.mrf.mxu2 }
 0x23a   : > { %v1037_v17 = vpop.f32.mrf.mxu2 }
 0x23b   : > { %2909 = vmatmul.msk.f32.vlgmr.msrb.gmra.mxu1 %vm552_vm0, %v1037_v17 }
 0x23c   : > { %1312 = vmatpush.msrb.mxu1 %v2937_v40 }
 0x23e   : > { %1313 = vmatpush.msrb.mxu1 %v2936_v42 }
 0x242   : > { %v1040_v19 = vpop.f32.mrf.mxu2 }
 0x243   : > { %2910 = vmatmul.msk.f32.gmra.mxu1 %vm552_vm0, %v1040_v19 }
 0x24a   : > { %v1043_v22 = vpop.f32.mrf.mxu2 }
 0x24b   : > { %2907 = vmatmul.msk.f32.vlgmr.msrb.gmra.mxu0 %vm552_vm0, %v1043_v22 }
 0x24c   : > { %1253 = vmatpush.msrb.mxu0 %v2827_v21  ;;  %v941_v21 = vpop.f32.mrf.mxu1 }
 0x24e   : > { %1254 = vmatpush.msrb.mxu0 %v2826_v24 }
 0x252   : > { %v1046_v25 = vpop.f32.mrf.mxu2 }
 0x253   : > { %2908 = vmatmul.msk.f32.gmra.mxu0 %vm552_vm0, %v1046_v25 }
 0x254   : > { %v1006_v22 = vpop.f32.mrf.mxu1 }
 0x25a   : > { %v1049_v27 = vpop.f32.mrf.mxu2 }
 0x25b   : > { %2913 = vmatmul.msk.f32.vlgmr.msra.gmra.mxu0 %vm552_vm0, %v1049_v27 }
 0x25c   : > { %v1009_v23 = vpop.f32.mrf.mxu1 }
 0x262   : > { %v1052_v29 = vpop.f32.mrf.mxu2 }
 0x263   : > { %2914 = vmatmul.msk.f32.gmra.mxu0 %vm552_vm0, %v1052_v29 }
 0x26a   : > { %v1055_v30 = vpop.f32.mrf.mxu2 }
 0x26b   : > { %2917 = vmatmul.msk.f32.vlgmr.msra.gmra.mxu1 %vm552_vm0, %v1055_v30  ;;  %2924 = vmatmul.msk.f32.vlgmr.msrb.gmra.mxu0 %vm552_vm0, %v3692_v2 }
 0x26c   : > { %1373 = vmatpush.msra.mxu1 %v2943_v44  ;;  %v907_v44 = vadd.f32 %v3895_v62, %v877_v16  ;;  %v1543_v16 = vstv %s4035_s28  ;;  %s4092_s28 = sld [smem:[#allocation5 + $0x183]] }
 0x26e   : > { %1374 = vmatpush.msra.mxu1 %v2942_v46  ;;  %v944_v59 = vadd.f32 %v938_v20, %v907_v44  ;;  %v1463_v20 = vstv %s4041_s19  ;;  %s4098_s19 = sld [smem:[#allocation7]] }
 0x270   : > { %v978_v39 = vadd.f32 %v3908_v13, %v944_v59 }
 0x272   : > { %v1058_v31 = vpop.f32.mrf.mxu2 }
 0x273   : > { %2918 = vmatmul.msk.f32.gmra.mxu1 %vm552_vm0, %v1058_v31  ;;  %2925 = vmatmul.msk.f32.gmra.mxu0 %vm552_vm0, %v3713_v5  ;;  %v688_v31 = vadd.f32 %v3883_v58, %v658_v51  ;;  %v760_v58 = vadd.f32 %v756_v8, %v726_v36  ;;  %v1515_v8 = vstv %s4033_s26  ;;  %s4088_s26 = sld [smem:[#allocation5 + $0x182]] }
 0x27a   : > { %v1061_v32 = vpop.f32.mrf.mxu2 }
 0x27b   : > { %2921 = vmatmul.msk.f32.vlgmr.msrb.gmra.mxu3 %vm552_vm0, %v1061_v32  ;;  %2926 = vmatmul.msk.f32.gmra.mxu0 %vm552_vm0, %v3737_v9  ;;  %v725_v32 = vadd.f32 %v3830_v37, %v688_v31 }
 0x27c   : > { %1407 = vmatpush.msrb.mxu3 %v2947_v48 }
 0x27d   : > { %v759_v40 = vadd.f32 %v753_v63, %v725_v32 }
 0x27e   : > { %1408 = vmatpush.msrb.mxu3 %v2946_v50  ;;  %v1015_v50 = vstv %s4023_s8  ;;  %s4068_s8 = sld [smem:[#allocation5 + $0x103]] }
 0x27f   : > { %v793_v37 = vadd.f32 %v3891_v60, %v759_v40  ;;  %v910_v60 = vadd.f32 %v3903_v1, %v880_v18 }
 0x281   : > { %v945_v51 = vadd.f32 %v941_v21, %v910_v60  ;;  %v1491_v21 = vstv %s4045_s20  ;;  %s4102_s20 = sld [smem:[#allocation7 + $0x1]] }
 0x282   : > { %v1064_v33 = vpop.f32.mrf.mxu2 }
 0x283   : > { %2922 = vmatmul.msk.f32.gmra.mxu3 %vm552_vm0, %v1064_v33  ;;  %2927 = vmatmul.msk.f32.gmra.mxu0 %vm552_vm0, %v3744_v10 }
 0x284   : > { %v1553_v60 = vstv %s4068_s8  ;;  %s4131_s8 = scalar_lea.vmem %s4639_s0, %s3132_s6 }
 0x28b   : > { %2928 = vmatmul.msk.f32.gmra.mxu0 %vm552_vm0, %v3751_v11 }
 0x293   : > { %2929 = vmatmul.msk.f32.gmra.mxu0 %vm552_vm0, %v3758_v12 }
 0x29b   : > { %2930 = vmatmul.msk.f32.gmra.mxu0 %vm552_vm0, %v3706_v4 }
 0x2a3   : > { %2931 = vmatmul.msk.f32.gmra.mxu0 %vm552_vm0, %v3727_v7 }
 0x2ab   : > { %2932 = vmatmul.msk.f32.gmra.mxu0 %vm552_vm0, %v3697_v3 }
 0x2b3   : > { %2933 = vmatmul.msk.f32.gmra.mxu0 %vm552_vm0, %v3718_v6 }
 0x2b8   : > { %v1125_v24 = vpop.f32.mrf.mxu1 }
 0x2c0   : > { %v1128_v25 = vpop.f32.mrf.mxu1 }
 0x2c8   : > { %v3968_v35 = vpop.f32.mrf.mxu0 }
 0x2c9   : > { %v1126_v62 = vadd.f32 %v1125_v24, %v3968_v35  ;;  %v1547_v24 = vstv %s4051_s29  ;;  %s4107_s29 = sld [smem:[#allocation7 + $0x3]] }
 0x2d0   : > { %v3973_v38 = vpop.f32.mrf.mxu0 }
 0x2d8   : > { %v3978_v41 = vpop.f32.mrf.mxu0 }
 0x2d9   : > { %v1163_v13 = vadd.f32 %v3978_v41, %v1126_v62  ;;  %v1459_v41 = vstv %s4027_s23  ;;  %s4073_s23 = sld [smem:[#allocation2 + $0x3]] }
 0x2e0   : > { %v3983_v43 = vpop.f32.mrf.mxu0 }
 0x2e8   : > { %v1256_v45 = vpop.f32.mrf.mxu0  ;;  %v1191_v26 = vpop.f32.mrf.mxu1 }
 0x2e9   : > { %2940 = vmatmul.msk.f32.vlgmr.msra.gmra.mxu3 %vm552_vm0, %v1256_v45  ;;  %v796_v45 = vstv %s795_s18  ;;  %v1197_v35 = vadd.f32 %v1191_v26, %v1163_v13  ;;  %s4064_s18 = sld [smem:[#allocation5 + $0x102]] }
 0x2ea   : > { %v797_v48 = vadd.f32 %v796_v45, %v793_v37 }
 0x2ec   : > { %v799_v1 = vmax.f32 %v797_v48, 0.0 }
 0x2ef   : > { %v1525_v48 = vstv %s4064_s18 }
 0x2f0   : > { %v1259_v47 = vpop.f32.mrf.mxu0  ;;  %v1194_v27 = vpop.f32.mrf.mxu1 }
 0x2f1   : > { %2941 = vmatmul.msk.f32.gmra.mxu3 %vm552_vm0, %v1259_v47  ;;  %v794_v47 = vadd.f32 %v3893_v61, %v760_v58 }
 0x2f3   : > { %v798_v61 = vadd.f32 %v796_v45, %v794_v47 }
 0x2f8   : > { %v1262_v49 = vpop.f32.mrf.mxu0 }
 0x2f9   : > { %2938 = vmatmul.msk.f32.vlgmr.msrb.gmra.mxu1 %vm552_vm0, %v1262_v49  ;;  %v1012_v49 = vadd.f32 %v1006_v22, %v978_v39 }
 0x2fa   : > { %1441 = vmatpush.msrb.mxu1 %v2951_v53  ;;  %v979_v53 = vadd.f32 %v3913_v15, %v945_v51  ;;  %v1487_v15 = vstv %s4030_s27  ;;  %s4082_s27 = sld [smem:[#allocation5 + $0x181]] }
 0x2fc   : > { %1442 = vmatpush.msrb.mxu1 %v2950_v55  ;;  %v1129_v55 = vadd.f32 %v1128_v25, %v3973_v38  ;;  %v1460_v38 = vmul.f32 %v1459_v41, %v799_v1 }
 0x2fe   : > { %v1225_v28 = vpop.f32.mrf.mxu3  ;;  %v1164_v63 = vadd.f32 %v3983_v43, %v1129_v55  ;;  %v1519_v43 = vstv %s4048_s30  ;;  %s4105_s30 = sld [smem:[#allocation7 + $0x2]] }
 0x2ff   : > { %v1231_v56 = vadd.f32 %v1225_v28, %v1197_v35  ;;  %v1516_v28 = vmul.f32 %v1515_v8, %v799_v1  ;;  %v1453_v35 = vstv %s4073_s23 }
 0x300   : > { %v1265_v52 = vpop.f32.mrf.mxu0  ;;  %v1198_v18 = vadd.f32 %v1194_v27, %v1164_v63  ;;  %v1544_v27 = vmul.f32 %v1543_v16, %v799_v1 }
 0x301   : > { %2939 = vmatmul.msk.f32.gmra.mxu1 %vm552_vm0, %v1265_v52 }
 0x306   : > { %v4015_v30 = vpop.f32.mrf.mxu3 }
 0x307   : > { %v1232_v26 = vadd.f32 %v4015_v30, %v1198_v18 }
 0x308   : > { %v1268_v54 = vpop.f32.mrf.mxu0 }
 0x309   : > { %2944 = vmatmul.msk.f32.vlgmr.msra.gmra.mxu1 %vm552_vm0, %v1268_v54  ;;  %v1016_v54 = vadd.f32 %v1015_v50, %v1012_v49 }
 0x310   : > { %v1271_v57 = vpop.f32.mrf.mxu0 }
 0x311   : > { %2945 = vmatmul.msk.f32.gmra.mxu1 %vm552_vm0, %v1271_v57  ;;  %v1013_v57 = vadd.f32 %v1009_v23, %v979_v53  ;;  %v1488_v23 = vmul.f32 %v1487_v15, %v799_v1 }
 0x313   : > { %v1017_v25 = vadd.f32 %v1015_v50, %v1013_v57 }
 0x315   : > { %v1019_v39 = vmax.f32 %v1017_v25, 0.0 }
 0x317   : > { %v1465_v55 = vmul.f32 %v1463_v20, %v1019_v39  ;;  %v1493_v63 = vmul.f32 %v1491_v21, %v1019_v39  ;;  %v1549_v18 = vmul.f32 %v1547_v24, %v1019_v39 }
 0x318   : > { %v1274_v0 = vpop.f32.mrf.mxu0 }
 0x319   : > { %2948 = vmatmul.msk.f32.vlgmr.msrb.gmra.mxu3 %vm552_vm0, %v1274_v0  ;;  %v1234_v0 = vstv %s4038_s16  ;;  %s4078_s16 = sld [smem:[#allocation5 + $0x180]] }
 0x31a   : > { %v1235_v22 = vadd.f32 %v1234_v0, %v1231_v56  ;;  %v1236_v47 = vadd.f32 %v1234_v0, %v1232_v26  ;;  %v1521_v0 = vmul.f32 %v1519_v43, %v1019_v39 }
 0x31c   : > { %v1237_v59 = vmax.f32 %v1235_v22, 0.0  ;;  %v1238_v57 = vmax.f32 %v1236_v47, 0.0 }
 0x31e   : > { %v1554_v56 = vmul.f32 %v1553_v60, %v1237_v59 }
 0x320   : > { %v1277_v14 = vpop.f32.mrf.mxu0 }
 0x321   : > { %2949 = vmatmul.msk.f32.gmra.mxu3 %vm552_vm0, %v1277_v14  ;;  %v800_v14 = vmax.f32 %v798_v61, 0.0 }
 0x323   : > { %v4084_v31 = vmul.f32 %v1459_v41, %v800_v14  ;;  %v4090_v36 = vmul.f32 %v1487_v15, %v800_v14  ;;  %v4094_v58 = vmul.f32 %v1515_v8, %v800_v14  ;;  %v1545_v62 = vmul.f32 %v1543_v16, %v800_v14 }
 0x324   : > { %v1526_v41 = vmul.f32 %v1525_v48, %v1237_v59  ;;  %v1475_v14 = vstv %s4078_s16  ;;  %v1531_v16 = vstv %s4088_s26 }
 0x328   : > { %v1280_v17 = vpop.f32.mrf.mxu0 }
 0x329   : > { %2952 = vmatmul.msk.f32.vlgmr.msrb.gmra.mxu1 %vm552_vm0, %v1280_v17  ;;  %v1018_v17 = vmax.f32 %v1016_v54, 0.0 }
 0x32b   : > { %v1464_v40 = vmul.f32 %v1463_v20, %v1018_v17  ;;  %v1492_v30 = vmul.f32 %v1491_v21, %v1018_v17  ;;  %v1520_v44 = vmul.f32 %v1519_v43, %v1018_v17  ;;  %v1548_v37 = vmul.f32 %v1547_v24, %v1018_v17 }
 0x32c   : > { %v1559_v17 = vstv %s4092_s28  ;;  %v1509_v24 = vstv %s4102_s20  ;;  %s4418_s28 = sld [smem:[#allocation8]] }
 0x32d   : > { %v1466_v50 = vadd.f32 %v1464_v40, %v1460_v38  ;;  %v1494_v13 = vadd.f32 %v1492_v30, %v1488_v23  ;;  %v1522_v51 = vadd.f32 %v1520_v44, %v1516_v28  ;;  %v1503_v38 = vstv %s4082_s27  ;;  %s4421_s20 = sld [smem:[#allocation10]] }
 0x32e   : > { %v1481_v30 = vstv %s4098_s19  ;;  %v1537_v44 = vstv %s4105_s30  ;;  %s4618_s19 = sshll.u32 %s3587_s25, 6  ;;  %s4423_s30 = sld [smem:[#allocation10 + $0x1]] }
 0x32f   : > { %v1528_v26 = vadd.f32 %v1526_v41, %v1522_v51  ;;  %v1551_v41 = vadd.f32 %v1549_v18, %v1545_v62  ;;  %v2828_v18 = vld [vmem:[%s4131_s8 + $0x10] sm:$0xff]  ;;  %s2629_s18 = scalar_lea.hbm %s4613_s12, %s4618_s19 }
 0x330   : > { %v1283_v19 = vpop.f32.mrf.mxu0  ;;  %s2632_s16 = sshll.u32 %s2629_s18, 4  ;;  %s2633_s16 = int_to_ptr.hbm [resolvable:$true] %s2632_s16 }
 0x331   : > { %2953 = vmatmul.msk.f32.gmra.mxu1 %vm552_vm0, %v1283_v19  ;;  %s3395_s26 = sshra.s32 %s2633_s16, 4  ;;  %s3396_s26 = int_to_ptr.hbm [resolvable:$true] %s3395_s26 }
 0x332   : > { %p3402_p3 = scmp.lt.s32.totalorder %s3396_s26, %s4613_s12 }
 0x36c   : > { %v4025_v42 = vpop.f32.mrf.mxu3 }
 0x374   : > { %v4053_v52 = vpop.f32.mrf.mxu3 }
 0x376   : > { %v4013_v29 = vpop.f32.mrf.mxu1 }
 0x377   : > { %v1345_v32 = vadd.f32 %v4025_v42, %v4013_v29  ;;  %v1469_v29 = vstv %s4057_s5  ;;  %v1497_v42 = vstv %s4060_s17  ;;  %s4124_s5 = sand.u32 1, %s3483_s22  }
 0x378   : > { %v1470_v1 = vmul.f32 %v1469_v29, %v1237_v59  ;;  %v1498_v53 = vmul.f32 %v1497_v42, %v1237_v59  ;;  %v1471_v21 = vmul.f32 %v1469_v29, %v1238_v57  ;;  %v1499_v47 = vmul.f32 %v1497_v42, %v1238_v57  ;;  %s4617_s4 = sshll.u32 %s4124_s5, 6  ;;  %s2601_s27 = scalar_lea.sflag [#allocation15], %s4124_s5 }
 0x379   : > { %v1527_v29 = vmul.f32 %v1525_v48, %v1238_v57  ;;  %s4140_s6 = scalar_lea.vmem [#allocation14], %s4617_s4  ;;  %s3397_s4 = scalar_lea.hbm %s3396_s26, 64 }
 0x37a   : > { %v1472_v22 = vadd.f32 %v1470_v1, %v1466_v50  ;;  %v1500_v20 = vadd.f32 %v1498_v53, %v1494_v13  ;;  %v1555_v50 = vmul.f32 %v1553_v60, %v1238_v57  ;;  %v1495_v1 = vadd.f32 %v1493_v63, %v4090_v36  ;;  %v541_v57 = vld [vmem:[%s4131_s8] sm:$0xff]  ;;  %s2630_s23 = sshll.u32 %s4140_s6, 4  ;;  %p3398_p0 = scmp.ne.s32.totalorder %s3396_s26, %s3397_s4  ;;  %s2631_s23 = int_to_ptr.vmem [resolvable:$true] %s2630_s23 }
 0x37c   : > { %v1501_v36 = vadd.f32 %v1499_v47, %v1495_v1  ;;  %p3399_p1 = pnand %p3398_p0, %p3604_p5 }
 0x37e   : > { %v4019_v33 = vpop.f32.mrf.mxu1  ;;  %p3400_p2 = pneg %p3399_p1 }
 0x37f   : > { %v1348_v15 = vadd.f32 %v4053_v52, %v4019_v33 }
 0x386   : > { %v1376_v46 = vpop.f32.mrf.mxu1 }
 0x387   : > { %v1382_v45 = vadd.f32 %v1376_v46, %v1345_v32  ;;  %v1550_v46 = vadd.f32 %v1548_v37, %v1544_v27 }
 0x389   : > { %v1556_v28 = vadd.f32 %v1554_v56, %v1550_v46  ;;  %v1467_v46 = vadd.f32 %v1465_v55, %v4084_v31 }
 0x38b   : > { %v1473_v48 = vadd.f32 %v1471_v21, %v1467_v46  ;;  %v2832_v21 = vld [vmem:[%s4131_s8 + $0x30] sm:$0xff]  ;;  %v3282_v46 = vld [vmem:[%s4638_s2 + $0x48] sm:$0xff] }
 0x38e   : > { %v4071_v19 = vpop.f32.mrf.mxu1 }
 0x38f   : > { %v1383_v43 = vadd.f32 %v4071_v19, %v1348_v15  ;;  %v1565_v19 = vstv %s4107_s29  ;;  %s3401_s29 = scalar_lea.hbm %s4613_s12, 128 }
 0x390   : > { %p3403_p4 = scmp.lt.s32.totalorder %s3401_s29, %s3397_s4 }
 0x392   : > { %p3404_p7 = por %p3403_p4, %p3402_p3 }
 0x394   : > { %p3405_p8 = pnand %p3404_p7, %p3400_p2 }
 0x39c   : > { %v1410_v34 = vpop.f32.mrf.mxu3 }
 0x39d   : > { %v1416_v49 = vadd.f32 %v1410_v34, %v1382_v45 }
 0x3a4   : > { %v1413_v23 = vpop.f32.mrf.mxu3 }
 0x3a5   : > { %v1417_v34 = vadd.f32 %v1413_v23, %v1383_v43 }
 0x3a6   : > { %v1444_v61 = vpop.f32.mrf.mxu1 }
 0x3a7   : > { %v1450_v54 = vadd.f32 %v1444_v61, %v1416_v49 }
 0x3a9   : > { %v1454_v8 = vadd.f32 %v1453_v35, %v1450_v54  ;;  %v1523_v54 = vadd.f32 %v1521_v0, %v4094_v58  ;;  %v1557_v58 = vadd.f32 %v1555_v50, %v1551_v41 }
 0x3ab   : > { %v1456_v25 = vmax.f32 %v1454_v8, 0.0  ;;  %v1529_v60 = vadd.f32 %v1527_v29, %v1523_v54 }
 0x3ad   : > { %v1476_v27 = vmul.f32 %v1475_v14, %v1456_v25  ;;  %v1504_v33 = vmul.f32 %v1503_v38, %v1456_v25  ;;  %v1532_v52 = vmul.f32 %v1531_v16, %v1456_v25  ;;  %v1560_v32 = vmul.f32 %v1559_v17, %v1456_v25 }
 0x3ae   : > { %v1447_v40 = vpop.f32.mrf.mxu1 }
 0x3af   : > { %v1478_v37 = vadd.f32 %v1476_v27, %v1472_v22  ;;  %v1506_v59 = vadd.f32 %v1504_v33, %v1500_v20  ;;  %v1534_v45 = vadd.f32 %v1532_v52, %v1528_v26  ;;  %v1562_v39 = vadd.f32 %v1560_v32, %v1556_v28  ;;  %v2830_v20 = vld [vmem:[%s4131_s8 + $0x20] sm:$0xff]  ;;  %v542_v52 = vld [vmem:[%s4131_s8 + $0x8] sm:$0xff]  ;;  %v2829_v32 = vld [vmem:[%s4131_s8 + $0x18] sm:$0xff] }
 0x3b0   : > { %v1451_v49 = vadd.f32 %v1447_v40, %v1417_v34  ;;  %v2831_v40 = vld [vmem:[%s4131_s8 + $0x28] sm:$0xff] }
 0x3b1   : > { %v1482_v13 = vadd.f32 %v1481_v30, %v1478_v37  ;;  %v1510_v51 = vadd.f32 %v1509_v24, %v1506_v59  ;;  %v1538_v61 = vadd.f32 %v1537_v44, %v1534_v45  ;;  %v1566_v42 = vadd.f32 %v1565_v19, %v1562_v39 }
 0x3b2   : > { %v1455_v53 = vadd.f32 %v1453_v35, %v1451_v49 }
 0x3b3   : > { %3247 = vtanh.f32 %v1482_v13  ;;  %v2994_v13 = vld [vmem:[%s4608_s7 + $0x38] sm:$0xff] }
 0x3b4   : > { %v1457_v31 = vmax.f32 %v1455_v53, 0.0  ;;  %3249 = vtanh.f32 %v1510_v51  ;;  %v2993_v51 = vld [vmem:[%s4608_s7 + $0x30] sm:$0xff]  ;;  %v2998_v53 = vld [vmem:[%s4608_s7 + $0x48] sm:$0xff] }
 0x3b5   : > { %3251 = vtanh.f32 %v1538_v61 }
 0x3b6   : > { %v1477_v62 = vmul.f32 %v1475_v14, %v1457_v31  ;;  %v1505_v35 = vmul.f32 %v1503_v38, %v1457_v31  ;;  %v1533_v55 = vmul.f32 %v1531_v16, %v1457_v31  ;;  %v1561_v56 = vmul.f32 %v1559_v17, %v1457_v31  ;;  %v3013_v31 = vld [vmem:[%s4608_s7 + $0x60] sm:$0xff] }
 0x3b7   : > { %3253 = vtanh.f32 %v1566_v42  ;;  %v2997_v42 = vld [vmem:[%s4608_s7 + $0x40] sm:$0xff] }
 0x3b8   : > { %v1479_v63 = vadd.f32 %v1477_v62, %v1473_v48  ;;  %v1507_v0 = vadd.f32 %v1505_v35, %v1501_v36  ;;  %v1535_v15 = vadd.f32 %v1533_v55, %v1529_v60  ;;  %v1563_v8 = vadd.f32 %v1561_v56, %v1557_v58  ;;  %v3014_v48 = vld [vmem:[%s4608_s7 + $0x68] sm:$0xff]  ;;  %v3012_v58 = vld [vmem:[%s4608_s7 + $0x58] sm:$0xff]  ;;  %v3011_v62 = vld [vmem:[%s4608_s7 + $0x50] sm:$0xff] }
 0x3b9   : > { %v3248_v22 = vpop.eup %3247  ;;  %v3020_v56 = vld [vmem:[%s4608_s7 + $0x78] sm:$0xff] }
 0x3ba   : > { %v3250_v23 = vpop.eup %3249  ;;  %v1483_v25 = vadd.f32 %v1481_v30, %v1479_v63  ;;  %v1511_v26 = vadd.f32 %v1509_v24, %v1507_v0  ;;  %v1570_v28 = vsub.f32 %v541_v57, %v3248_v22  ;;  %v1539_v14 = vadd.f32 %v1537_v44, %v1535_v15  ;;  %v2833_v44 = vld [vmem:[%s4131_s8 + $0x38] sm:$0xff]  ;;  %v3019_v57 = vld [vmem:[%s4608_s7 + $0x70] sm:$0xff]  ;;  %v3024_v15 = vld [vmem:[%s4608_s7 + $0x88] sm:$0xff]  ;;  %s4430_s8 = sld [smem:[#allocation10 + $0x2]] }
 0x3bb   : > { %v3252_v38 = vpop.eup %3251  ;;  %v1572_v16 = vsub.f32 %v2828_v18, %v3250_v23  ;;  %v1567_v17 = vadd.f32 %v1565_v19, %v1563_v8  ;;  %v3281_v19 = vld [vmem:[%s4638_s2 + $0x40] sm:$0xff]  ;;  %v3028_v22 = vld [vmem:[%s4608_s7 + $0x98] sm:$0xff]  ;;  %v3027_v23 = vld [vmem:[%s4608_s7 + $0x90] sm:$0xff] }
 0x3bc   : > { %3255 = vtanh.f32 %v1483_v25  ;;  %2565 = vst.msk [vmem:[%s4140_s6] sm:$0xff] %vm552_vm0, %v1570_v28  ;;  %v1574_v43 = vsub.f32 %v2830_v20, %v3252_v38  ;;  %v3023_v20 = vld [vmem:[%s4608_s7 + $0x80] sm:$0xff]  ;;  %v3043_v38 = vld [vmem:[%s4608_s7 + $0xa8] sm:$0xff] }
 0x3bd   : > { %v3254_v27 = vpop.eup %3253  ;;  %3257 = vtanh.f32 %v1511_v26  ;;  %3112 = vst.msk [vmem:[%s4140_s6 + $0x10] sm:$0xff] %vm552_vm0, %v1572_v16 }
 0x3be   : > { %3259 = vtanh.f32 %v1539_v14  ;;  %3116 = vst.msk [vmem:[%s4140_s6 + $0x20] sm:$0xff] %vm552_vm0, %v1574_v43  ;;  %v1576_v33 = vsub.f32 %v2832_v21, %v3254_v27 }
 0x3bf   : > { %3261 = vtanh.f32 %v1567_v17  ;;  %v3042_v17 = vld [vmem:[%s4608_s7 + $0xa0] sm:$0xff] }
 0x3c0   : > { %3120 = vst.msk [vmem:[%s4140_s6 + $0x30] sm:$0xff] %vm552_vm0, %v1576_v33 }
 0x3c2   : > { %v3256_v34 = vpop.eup %3255 }
 0x3c3   : > { %v3258_v30 = vpop.eup %3257  ;;  %v1571_v24 = vsub.f32 %v542_v52, %v3256_v34  ;;  %v3050_v34 = vld [vmem:[%s4608_s7 + $0xc0] sm:$0xff] }
 0x3c4   : > { %v3260_v37 = vpop.eup %3259  ;;  %v1573_v59 = vsub.f32 %v2829_v32, %v3258_v30  ;;  %v3055_v32 = vld [vmem:[%s4608_s7 + $0xd8] sm:$0xff] }
 0x3c5   : > { %v3262_v45 = vpop.eup %3261  ;;  %1592 = vmatpush.msra.mxu2 %v1571_v24  ;;  %2566 = vst.msk [vmem:[%s4140_s6 + $0x8] sm:$0xff] %vm552_vm0, %v1571_v24  ;;  %v1575_v39 = vsub.f32 %v2831_v40, %v3260_v37  ;;  %v3054_v40 = vld [vmem:[%s4608_s7 + $0xd0] sm:$0xff] }
 0x3c6   : > { %1810 = vmatpush.msra.mxu0 %v1573_v59  ;;  %3113 = vst.msk [vmem:[%s4140_s6 + $0x18] sm:$0xff] %vm552_vm0, %v1573_v59  ;;  %v1577_v47 = vsub.f32 %v2833_v44, %v3262_v45  ;;  %v3059_v44 = vld [vmem:[%s4608_s7 + $0xe8] sm:$0xff] }
 0x3c7   : > { %1593 = vmatpush.msra.mxu2 %v1570_v28  ;;  %3117 = vst.msk [vmem:[%s4140_s6 + $0x28] sm:$0xff] %vm552_vm0, %v1575_v39  ;;  %v3045_v28 = vld [vmem:[%s4608_s7 + $0xb8] sm:$0xff]  ;;  %v3076_v45 = vld [vmem:[%s4608_s7 + $0x108] sm:$0xff] }
 0x3c8   : > { %1811 = vmatpush.msra.mxu0 %v1572_v16  ;;  %2973 = vmatmul.msk.f32.vlgmr.msra.gmra.mxu2 %vm552_vm0, %v3692_v2  ;;  %3121 = vst.msk [vmem:[%s4140_s6 + $0x38] sm:$0xff] %vm552_vm0, %v1577_v47  ;;  %v3044_v16 = vld [vmem:[%s4608_s7 + $0xb0] sm:$0xff] }
 0x3c9   : > { %2029 = vmatpush.msrb.mxu2 %v1575_v39  ;;  %3001 = vmatmul.msk.f32.vlgmr.msra.gmra.mxu0 %vm552_vm0, %v3692_v2  ;;  %v3058_v39 = vld [vmem:[%s4608_s7 + $0xe0] sm:$0xff] }
 0x3ca   : > { %2248 = vmatpush.msrb.mxu0 %v1577_v47  ;;  %v3075_v47 = vld [vmem:[%s4608_s7 + $0x100] sm:$0xff] }
 0x3cb   : > { %2030 = vmatpush.msrb.mxu2 %v1574_v43 }
 0x3cc   : > { %2249 = vmatpush.msrb.mxu0 %v1576_v33  ;;  %v3051_v33 = vld [vmem:[%s4608_s7 + $0xc8] sm:$0xff] }
 0x3d0   : > { %2974 = vmatmul.msk.f32.gmra.mxu2 %vm552_vm0, %v3713_v5 }
 0x3d1   : > { %3002 = vmatmul.msk.f32.gmra.mxu0 %vm552_vm0, %v3713_v5 }
 0x3d8   : > { %2975 = vmatmul.msk.f32.gmra.mxu2 %vm552_vm0, %v3737_v9 }
 0x3d9   : > { %3003 = vmatmul.msk.f32.gmra.mxu0 %vm552_vm0, %v3737_v9 }
 0x3e0   : > { %2976 = vmatmul.msk.f32.gmra.mxu2 %vm552_vm0, %v3744_v10 }
 0x3e1   : > { %3004 = vmatmul.msk.f32.gmra.mxu0 %vm552_vm0, %v3744_v10 }
 0x3e8   : > { %2977 = vmatmul.msk.f32.gmra.mxu2 %vm552_vm0, %v3751_v11 }
 0x3e9   : > { %3005 = vmatmul.msk.f32.gmra.mxu0 %vm552_vm0, %v3751_v11 }
 0x3f0   : > { %2978 = vmatmul.msk.f32.gmra.mxu2 %vm552_vm0, %v3758_v12 }
 0x3f1   : > { %3006 = vmatmul.msk.f32.gmra.mxu0 %vm552_vm0, %v3758_v12 }
 0x3f8   : > { %2979 = vmatmul.msk.f32.gmra.mxu2 %vm552_vm0, %v3706_v4 }
 0x3f9   : > { %3007 = vmatmul.msk.f32.gmra.mxu0 %vm552_vm0, %v3706_v4 }
 0x400   : > { %2980 = vmatmul.msk.f32.gmra.mxu2 %vm552_vm0, %v3727_v7 }
 0x401   : > { %3008 = vmatmul.msk.f32.gmra.mxu0 %vm552_vm0, %v3727_v7  ;;  %v3279_v7 = vld [vmem:[%s4638_s2 + $0x30] sm:$0xff] }
 0x408   : > { %2981 = vmatmul.msk.f32.gmra.mxu2 %vm552_vm0, %v3697_v3 }
 0x409   : > { %3009 = vmatmul.msk.f32.gmra.mxu0 %vm552_vm0, %v3697_v3  ;;  %v1626_v3 = vld [vmem:[%s4608_s7 + $0x8] sm:$0xff] }
 0x40a   : > { %1679 = vmatpush.msra.mxu1 %v1626_v3 }
 0x410   : > { %2982 = vmatmul.msk.f32.gmra.mxu2 %vm552_vm0, %v3718_v6 }
 0x411   : > { %3010 = vmatmul.msk.f32.gmra.mxu0 %vm552_vm0, %v3718_v6  ;;  %v2983_v6 = vld [vmem:[%s4608_s7 + $0x10] sm:$0xff] }
 0x418   : > { %3032 = vmatmul.msk.f32.vlgmr.msrb.gmra.mxu2 %vm552_vm0, %v3692_v2 }
 0x419   : > { %3063 = vmatmul.msk.f32.vlgmr.msrb.gmra.mxu0 %vm552_vm0, %v3692_v2  ;;  %v1625_v2 = vld [vmem:[%s4608_s7] sm:$0xff] }
 0x41a   : > { %1680 = vmatpush.msra.mxu1 %v1625_v2 }
 0x41c   : > { %1745 = vmatpush.msrb.mxu1 %v2994_v13  ;;  %v3089_v13 = vld [vmem:[%s4608_s7 + $0x130] sm:$0xff] }
 0x41e   : > { %1746 = vmatpush.msrb.mxu1 %v2993_v51 }
 0x420   : > { %3033 = vmatmul.msk.f32.gmra.mxu2 %vm552_vm0, %v3713_v5 }
 0x421   : > { %3064 = vmatmul.msk.f32.gmra.mxu0 %vm552_vm0, %v3713_v5  ;;  %v2984_v5 = vld [vmem:[%s4608_s7 + $0x18] sm:$0xff] }
 0x422   : > { %1650 = vmatpush.msra.mxu3 %v2984_v5  ;;  %v3074_v5 = vld [vmem:[%s4608_s7 + $0xf8] sm:$0xff] }
 0x424   : > { %1651 = vmatpush.msra.mxu3 %v2983_v6 }
 0x428   : > { %3034 = vmatmul.msk.f32.gmra.mxu2 %vm552_vm0, %v3737_v9 }
 0x429   : > { %3065 = vmatmul.msk.f32.gmra.mxu0 %vm552_vm0, %v3737_v9 }
 0x430   : > { %3035 = vmatmul.msk.f32.gmra.mxu2 %vm552_vm0, %v3744_v10 }
 0x431   : > { %3066 = vmatmul.msk.f32.gmra.mxu0 %vm552_vm0, %v3744_v10  ;;  %v2990_v10 = vld [vmem:[%s4608_s7 + $0x28] sm:$0xff] }
 0x432   : > { %1711 = vmatpush.msrb.mxu3 %v2990_v10  ;;  %v3081_v10 = vld [vmem:[%s4608_s7 + $0x110] sm:$0xff] }
 0x438   : > { %3036 = vmatmul.msk.f32.gmra.mxu2 %vm552_vm0, %v3751_v11 }
 0x439   : > { %3067 = vmatmul.msk.f32.gmra.mxu0 %vm552_vm0, %v3751_v11  ;;  %v2989_v11 = vld [vmem:[%s4608_s7 + $0x20] sm:$0xff] }
 0x43a   : > { %1712 = vmatpush.msrb.mxu3 %v2989_v11 }
 0x440   : > { %3037 = vmatmul.msk.f32.gmra.mxu2 %vm552_vm0, %v3758_v12 }
 0x441   : > { %3068 = vmatmul.msk.f32.gmra.mxu0 %vm552_vm0, %v3758_v12 }
 0x446   : > { %v4251_v12 = vpop.f32.mrf.mxu0 }
 0x448   : > { %3038 = vmatmul.msk.f32.gmra.mxu2 %vm552_vm0, %v3706_v4  ;;  %v3280_v4 = vld [vmem:[%s4638_s2 + $0x38] sm:$0xff] }
 0x449   : > { %3069 = vmatmul.msk.f32.gmra.mxu0 %vm552_vm0, %v3279_v7  ;;  %v3082_v7 = vld [vmem:[%s4608_s7 + $0x118] sm:$0xff] }
 0x44b   : > { %v1595_v9 = vpop.f32.mrf.mxu2 }
 0x44c   : > { %2987 = vmatmul.msk.f32.vlgmr.msra.gmra.mxu1 %vm552_vm0, %v1595_v9  ;;  %v3073_v9 = vld [vmem:[%s4608_s7 + $0xf0] sm:$0xff] }
 0x44d   : > { %1869 = vmatpush.msra.mxu1 %v3014_v48 }
 0x44e   : > { %v4259_v49 = vpop.f32.mrf.mxu0 }
 0x44f   : > { %1870 = vmatpush.msra.mxu1 %v3013_v31 }
 0x450   : > { %3039 = vmatmul.msk.f32.gmra.mxu2 %vm552_vm0, %v3280_v4 }
 0x451   : > { %3070 = vmatmul.msk.f32.gmra.mxu0 %vm552_vm0, %v3280_v4 }
 0x453   : > { %v1598_v29 = vpop.f32.mrf.mxu2 }
 0x454   : > { %2988 = vmatmul.msk.f32.gmra.mxu1 %vm552_vm0, %v1598_v29  ;;  %v3086_v29 = vld [vmem:[%s4608_s7 + $0x128] sm:$0xff] }
 0x456   : > { %v1819_v61 = vpop.f32.mrf.mxu0 }
 0x458   : > { %3040 = vmatmul.msk.f32.gmra.mxu2 %vm552_vm0, %v3281_v19 }
 0x459   : > { %3071 = vmatmul.msk.f32.gmra.mxu0 %vm552_vm0, %v3281_v19  ;;  %v3085_v19 = vld [vmem:[%s4608_s7 + $0x120] sm:$0xff] }
 0x45b   : > { %v1601_v50 = vpop.f32.mrf.mxu2 }
 0x45c   : > { %2985 = vmatmul.msk.f32.vlgmr.msra.gmra.mxu3 %vm552_vm0, %v1601_v50  ;;  %v3090_v50 = vld [vmem:[%s4608_s7 + $0x138] sm:$0xff] }
 0x45d   : > { %1779 = vmatpush.msra.mxu3 %v2998_v53 }
 0x45e   : > { %v1822_v54 = vpop.f32.mrf.mxu0 }
 0x45f   : > { %1780 = vmatpush.msra.mxu3 %v2997_v42 }
 0x460   : > { %3041 = vmatmul.msk.f32.gmra.mxu2 %vm552_vm0, %v3282_v46 }
 0x461   : > { %3072 = vmatmul.msk.f32.gmra.mxu0 %vm552_vm0, %v3282_v46 }
 0x463   : > { %v1604_v1 = vpop.f32.mrf.mxu2 }
 0x464   : > { %2986 = vmatmul.msk.f32.gmra.mxu3 %vm552_vm0, %v1604_v1 }
 0x466   : > { %v1825_v36 = vpop.f32.mrf.mxu0 }
 0x46b   : > { %v1607_v41 = vpop.f32.mrf.mxu2 }
 0x46c   : > { %2991 = vmatmul.msk.f32.vlgmr.msrb.gmra.mxu3 %vm552_vm0, %v1607_v41 }
 0x46d   : > { %1898 = vmatpush.msrb.mxu3 %v3012_v58 }
 0x46e   : > { %v1828_v35 = vpop.f32.mrf.mxu0 }
 0x46f   : > { %1899 = vmatpush.msrb.mxu3 %v3011_v62 }
 0x473   : > { %v1610_v60 = vpop.f32.mrf.mxu2 }
 0x474   : > { %2992 = vmatmul.msk.f32.gmra.mxu3 %vm552_vm0, %v1610_v60 }
 0x476   : > { %v1831_v63 = vpop.f32.mrf.mxu0 }
 0x47b   : > { %v1613_v55 = vpop.f32.mrf.mxu2 }
 0x47c   : > { %2995 = vmatmul.msk.f32.vlgmr.msrb.gmra.mxu1 %vm552_vm0, %v1613_v55 }
 0x47d   : > { %1930 = vmatpush.msrb.mxu1 %v3020_v56 }
 0x47e   : > { %v1834_v18 = vpop.f32.mrf.mxu0 }
 0x47f   : > { %1931 = vmatpush.msrb.mxu1 %v3019_v57 }
 0x483   : > { %v1616_v0 = vpop.f32.mrf.mxu2 }
 0x484   : > { %2996 = vmatmul.msk.f32.gmra.mxu1 %vm552_vm0, %v1616_v0 }
 0x486   : > { %v1837_v26 = vpop.f32.mrf.mxu0 }
 0x48b   : > { %v1619_v8 = vpop.f32.mrf.mxu2 }
 0x48c   : > { %2999 = vmatmul.msk.f32.vlgmr.msra.gmra.mxu3 %vm552_vm0, %v1619_v8  ;;  %3015 = vmatmul.msk.f32.vlgmr.msra.gmra.mxu1 %vm552_vm0, %v1819_v61 }
 0x48d   : > { %1964 = vmatpush.msra.mxu3 %v3024_v15  ;;  %1998 = vmatpush.msra.mxu1 %v3028_v22 }
 0x48e   : > { %v1840_v21 = vpop.f32.mrf.mxu0 }
 0x48f   : > { %1965 = vmatpush.msra.mxu3 %v3023_v20  ;;  %1999 = vmatpush.msra.mxu1 %v3027_v23 }
 0x493   : > { %v1622_v25 = vpop.f32.mrf.mxu2 }
 0x494   : > { %3000 = vmatmul.msk.f32.gmra.mxu3 %vm552_vm0, %v1622_v25  ;;  %3016 = vmatmul.msk.f32.gmra.mxu1 %vm552_vm0, %v1822_v54 }
 0x496   : > { %v4341_v27 = vpop.f32.mrf.mxu0 }
 0x49b   : > { %v2032_v14 = vpop.f32.mrf.mxu2 }
 0x49c   : > { %3017 = vmatmul.msk.f32.vlgmr.msrb.gmra.mxu3 %vm552_vm0, %v4251_v12  ;;  %3021 = vmatmul.msk.f32.vlgmr.msrb.gmra.mxu1 %vm552_vm0, %v1825_v36 }
 0x49d   : > { %2088 = vmatpush.msrb.mxu3 %v3045_v28  ;;  %2117 = vmatpush.msrb.mxu1 %v3043_v38 }
 0x49e   : > { %v2254_v30 = vpop.f32.mrf.mxu0 }
 0x49f   : > { %2089 = vmatpush.msrb.mxu3 %v3044_v16  ;;  %2118 = vmatpush.msrb.mxu1 %v3042_v17 }
 0x4a3   : > { %v2035_v43 = vpop.f32.mrf.mxu2 }
 0x4a4   : > { %3018 = vmatmul.msk.f32.gmra.mxu3 %vm552_vm0, %v4259_v49  ;;  %3022 = vmatmul.msk.f32.gmra.mxu1 %vm552_vm0, %v1828_v35 }
 0x4a6   : > { %v2257_v59 = vpop.f32.mrf.mxu0 }
 0x4ab   : > { %v2038_v52 = vpop.f32.mrf.mxu2 }
 0x4ac   : > { %3025 = vmatmul.msk.f32.vlgmr.msra.gmra.mxu3 %vm552_vm0, %v1831_v63  ;;  %3029 = vmatmul.msk.f32.vlgmr.msra.gmra.mxu1 %vm552_vm0, %v1837_v26 }
 0x4ad   : > { %2149 = vmatpush.msra.mxu3 %v3051_v33  ;;  %2183 = vmatpush.msra.mxu1 %v3055_v32 }
 0x4ae   : > { %v2260_v2 = vpop.f32.mrf.mxu0 }
 0x4af   : > { %2150 = vmatpush.msra.mxu3 %v3050_v34  ;;  %2184 = vmatpush.msra.mxu1 %v3054_v40 }
 0x4b3   : > { %v2041_v24 = vpop.f32.mrf.mxu2 }
 0x4b4   : > { %3026 = vmatmul.msk.f32.gmra.mxu3 %vm552_vm0, %v1834_v18  ;;  %3030 = vmatmul.msk.f32.gmra.mxu1 %vm552_vm0, %v1840_v21 }
 0x4b6   : > { %v2263_v11 = vpop.f32.mrf.mxu0 }
 0x4bb   : > { %v2044_v37 = vpop.f32.mrf.mxu2 }
 0x4bc   : > { %3046 = vmatmul.msk.f32.vlgmr.msrb.gmra.mxu3 %vm552_vm0, %v2038_v52  ;;  %3048 = vmatmul.msk.f32.vlgmr.msrb.gmra.mxu1 %vm552_vm0, %v2032_v14 }
 0x4bd   : > { %2217 = vmatpush.msrb.mxu3 %v3059_v44  ;;  %2307 = vmatpush.msrb.mxu1 %v3076_v45 }
 0x4be   : > { %v2266_v4 = vpop.f32.mrf.mxu0 }
 0x4bf   : > { %2218 = vmatpush.msrb.mxu3 %v3058_v39  ;;  %2308 = vmatpush.msrb.mxu1 %v3075_v47 }
 0x4c3   : > { %v2047_v3 = vpop.f32.mrf.mxu2 }
 0x4c4   : > { %3047 = vmatmul.msk.f32.gmra.mxu3 %vm552_vm0, %v2041_v24  ;;  %3049 = vmatmul.msk.f32.gmra.mxu1 %vm552_vm0, %v2035_v43 }
 0x4c6   : > { %v2269_v53 = vpop.f32.mrf.mxu0 }
 0x4c9   : > { %v1682_v51 = vpop.f32.mrf.mxu1 }
 0x4cb   : > { %v2050_v6 = vpop.f32.mrf.mxu2 }
 0x4cc   : > { %3052 = vmatmul.msk.f32.vlgmr.msra.gmra.mxu3 %vm552_vm0, %v2044_v37  ;;  %3056 = vmatmul.msk.f32.vlgmr.msra.gmra.mxu1 %vm552_vm0, %v2050_v6 }
 0x4cd   : > { %2336 = vmatpush.msra.mxu3 %v3074_v5  ;;  %2368 = vmatpush.msra.mxu1 %v3082_v7 }
 0x4ce   : > { %v2272_v48 = vpop.f32.mrf.mxu0 }
 0x4cf   : > { %2337 = vmatpush.msra.mxu3 %v3073_v9  ;;  %2369 = vmatpush.msra.mxu1 %v3081_v10 }
 0x4d1   : > { %v1685_v41 = vpop.f32.mrf.mxu1 }
 0x4d3   : > { %v2053_v12 = vpop.f32.mrf.mxu2 }
 0x4d4   : > { %3053 = vmatmul.msk.f32.gmra.mxu3 %vm552_vm0, %v2047_v3  ;;  %3057 = vmatmul.msk.f32.gmra.mxu1 %vm552_vm0, %v2053_v12 }
 0x4d6   : > { %v2275_v60 = vpop.f32.mrf.mxu0 }
 0x4db   : > { %v2056_v49 = vpop.f32.mrf.mxu2 }
 0x4dc   : > { %3060 = vmatmul.msk.f32.vlgmr.msrb.gmra.mxu3 %vm552_vm0, %v2056_v49  ;;  %3077 = vmatmul.msk.f32.vlgmr.msrb.gmra.mxu1 %vm552_vm0, %v2257_v59 }
 0x4dd   : > { %2402 = vmatpush.msrb.mxu3 %v3086_v29  ;;  %2436 = vmatpush.msrb.mxu1 %v3090_v50 }
 0x4de   : > { %v2278_v57 = vpop.f32.mrf.mxu0 }
 0x4df   : > { %v1653_v61 = vpop.f32.mrf.mxu3  ;;  %2403 = vmatpush.msrb.mxu3 %v3085_v19  ;;  %2437 = vmatpush.msrb.mxu1 %v3089_v13 }
 0x4e0   : > { %v1683_v46 = vadd.f32 %v1682_v51, %v1653_v61 }
 0x4e3   : > { %v2059_v1 = vpop.f32.mrf.mxu2 }
 0x4e4   : > { %3061 = vmatmul.msk.f32.gmra.mxu3 %vm552_vm0, %v2059_v1  ;;  %3078 = vmatmul.msk.f32.gmra.mxu1 %vm552_vm0, %v2260_v2 }
 0x4e7   : > { %v1656_v54 = vpop.f32.mrf.mxu3 }
 0x4e8   : > { %v1686_v42 = vadd.f32 %v1685_v41, %v1656_v54 }
 0x4ec   : > { %3079 = vmatmul.msk.f32.vlgmr.msra.gmra.mxu3 %vm552_vm0, %v4341_v27  ;;  %3083 = vmatmul.msk.f32.vlgmr.msra.gmra.mxu1 %vm552_vm0, %v2263_v11 }
 0x4ef   : > { %v1714_v31 = vpop.f32.mrf.mxu3 }
 0x4f0   : > { %v1720_v36 = vadd.f32 %v1714_v31, %v1683_v46 }
 0x4f4   : > { %3080 = vmatmul.msk.f32.gmra.mxu3 %vm552_vm0, %v2254_v30  ;;  %3084 = vmatmul.msk.f32.gmra.mxu1 %vm552_vm0, %v2266_v4 }
 0x4f7   : > { %v1717_v58 = vpop.f32.mrf.mxu3 }
 0x4f8   : > { %v1721_v62 = vadd.f32 %v1717_v58, %v1686_v42 }
 0x4f9   : > { %v1748_v35 = vpop.f32.mrf.mxu1 }
 0x4fa   : > { %v1754_v55 = vadd.f32 %v1748_v35, %v1720_v36 }
 0x4fc   : > { %3087 = vmatmul.msk.f32.vlgmr.msrb.gmra.mxu3 %vm552_vm0, %v2269_v53  ;;  %3091 = vmatmul.msk.f32.vlgmr.msrb.gmra.mxu1 %vm552_vm0, %v2275_v60 }
 0x501   : > { %v1751_v56 = vpop.f32.mrf.mxu1 }
 0x502   : > { %v1755_v63 = vadd.f32 %v1751_v56, %v1721_v62 }
 0x504   : > { %3088 = vmatmul.msk.f32.gmra.mxu3 %vm552_vm0, %v2272_v48  ;;  %3092 = vmatmul.msk.f32.gmra.mxu1 %vm552_vm0, %v2278_v57 }
 0x509   : > { %v1872_v0 = vpop.f32.mrf.mxu1 }
 0x50f   : > { %v1782_v15 = vpop.f32.mrf.mxu3 }
 0x510   : > { %v1788_v8 = vadd.f32 %v1782_v15, %v1754_v55 }
 0x511   : > { %v1875_v18 = vpop.f32.mrf.mxu1 }
 0x517   : > { %v1785_v22 = vpop.f32.mrf.mxu3 }
 0x518   : > { %v4416_v20 = vadd.f32 %v1785_v22, %v1755_v63 }
 0x519   : > { %v1933_v23 = vpop.f32.mrf.mxu1 }
 0x51f   : > { %v1901_v25 = vpop.f32.mrf.mxu3 }
 0x520   : > { %v1902_v26 = vadd.f32 %v1901_v25, %v1872_v0 }
 0x521   : > { %v1936_v28 = vpop.f32.mrf.mxu1 }
 0x522   : > { %v1939_v14 = vadd.f32 %v1933_v23, %v1902_v26 }
 0x527   : > { %v1904_v38 = vpop.f32.mrf.mxu3 }
 0x528   : > { %3408 = shalt.err (!%p3405_p8)
}
 0x529   : > { %s3499_s6 = smov 128   ;;  %s3500_s18 = smov 8   ;;  %v1905_v16 = vadd.f32 %v1904_v38, %v1875_v18  ;;  %v2001_v17 = vpop.f32.mrf.mxu1  ;;  %v1791_v43 = vstv %s4418_s28  ;;  %v2454_v24 = vstv %s4421_s20  ;;  %v2482_v44 = vstv %s4423_s30 }
 0x52a   : > { %3165 = dma.vmem_to_hbm [thread:$0]  (%p3604_p5), %s2631_s23, 1024, %s2633_s16, %s2601_s27, %s3499_s6, %s3499_s6, %s3500_s18   ;;  %v1792_v27 = vadd.f32 %v1791_v43, %v1788_v8  ;;  %v1793_v11 = vadd.f32 %v1791_v43, %v4416_v20 }
 0x52b   : > { %s4447_s2 = sld [smem:[#allocation10 + $0x3]]  ;;  %v1940_v21 = vadd.f32 %v1936_v28, %v1905_v16  ;;  %v2510_v37 = vstv %s4430_s8 }
 0x52c   : > { %s4449_s0 = sld [smem:[#allocation8 + $0x1]]  ;;  %v1794_v40 = vmax.f32 %v1792_v27, 0.0  ;;  %v1795_v54 = vmax.f32 %v1793_v11, 0.0 }
 0x52d   : > { %s4451_s1 = sld [smem:[#allocation10 + $0x80]] }
 0x52e   : > { %s4454_s4 = sld [smem:[#allocation10 + $0x81]]  ;;  %v2455_v5 = vmul.f32 %v2454_v24, %v1794_v40  ;;  %v2483_v7 = vmul.f32 %v2482_v44, %v1794_v40  ;;  %v2511_v9 = vmul.f32 %v2510_v37, %v1794_v40  ;;  %v2456_v31 = vmul.f32 %v2454_v24, %v1795_v54 }
 0x52f   : > { %s4456_s19 = sld [smem:[#allocation10 + $0x82]]  ;;  %v1967_v33 = vpop.f32.mrf.mxu3  ;;  %v2484_v36 = vmul.f32 %v2482_v44, %v1795_v54  ;;  %v2512_v60 = vmul.f32 %v2510_v37, %v1795_v54 }
 0x530   : > { %s4458_s23 = sld [smem:[#allocation10 + $0x83]]  ;;  %v1973_v52 = vadd.f32 %v1967_v33, %v1939_v14 }
 0x531   : > { %v2004_v34 = vpop.f32.mrf.mxu1  ;;  %v2538_v59 = vstv %s4447_s2  ;;  %s4486_s2 = sld [smem:[#allocation8 + $0x2]] }
 0x532   : > { %v2010_v32 = vstv %s4449_s0  ;;  %v2007_v30 = vadd.f32 %v2001_v17, %v1973_v52  ;;  %v2539_v10 = vmul.f32 %v2538_v59, %v1794_v40  ;;  %v2540_v58 = vmul.f32 %v2538_v59, %v1795_v54  ;;  %s4488_s28 = sld [smem:[#allocation10 + $0x100]] }
 0x533   : > { %v2458_v39 = vstv %s4451_s1  ;;  %s4490_s20 = sld [smem:[#allocation10 + $0x101]] }
 0x534   : > { %v2011_v45 = vadd.f32 %v2010_v32, %v2007_v30  ;;  %v2486_v47 = vstv %s4454_s4  ;;  %s4493_s30 = sld [smem:[#allocation10 + $0x102]] }
 0x535   : > { %v2514_v3 = vstv %s4456_s19  ;;  %s4495_s8 = sld [smem:[#allocation10 + $0x103]] }
 0x536   : > { %v2542_v2 = vstv %s4458_s23  ;;  %v2013_v6 = vmax.f32 %v2011_v45, 0.0  ;;  %s4497_s16 = sld [smem:[#allocation8 + $0x3]]  ;;  %s4640_s23 = sshll.u32 %s4124_s5, 6 }
 0x537   : > { %v1970_v12 = vpop.f32.mrf.mxu3  ;;  %s4499_s27 = sld [smem:[#allocation10 + $0x180]] }
 0x538   : > { %v2459_v4 = vmul.f32 %v2458_v39, %v2013_v6  ;;  %v2487_v29 = vmul.f32 %v2486_v47, %v2013_v6  ;;  %v2515_v49 = vmul.f32 %v2514_v3, %v2013_v6  ;;  %v2543_v19 = vmul.f32 %v2542_v2, %v2013_v6  ;;  %s4501_s26 = sld [smem:[#allocation10 + $0x181]] }
 0x539   : > { %v1974_v50 = vadd.f32 %v1970_v12, %v1940_v21  ;;  %v2120_v13 = vpop.f32.mrf.mxu1  ;;  %s4503_s29 = sld [smem:[#allocation10 + $0x182]] }
 0x53a   : > { %v4470_v51 = vadd.f32 %v2459_v4, %v2455_v5  ;;  %v4472_v61 = vadd.f32 %v2487_v29, %v2483_v7  ;;  %v4474_v46 = vadd.f32 %v2515_v49, %v2511_v9  ;;  %v4476_v1 = vadd.f32 %v2543_v19, %v2539_v10  ;;  %s4505_s17 = sld [smem:[#allocation10 + $0x183]] }
 0x53b   : > { %v2008_v53 = vadd.f32 %v2004_v34, %v1974_v50  ;;  %v2229_v34 = vstv %s4486_s2  ;;  %s4507_s0 = sld [smem:[#allocation11]]  ;;  %v2548_v7 = vstv %s4495_s8  ;;  %s4540_s2 = scalar_lea.vmem [#allocation13], %s4640_s23 }
 0x53c   : > { %s4512_s1 = sld [smem:[#allocation11 + $0x1]]  ;;  %v2448_v10 = vstv %s4497_s16  ;;  %s2613_s16 = sshll.u32 %s4540_s2, 4  ;;  %s2614_s16 = int_to_ptr.vmem [resolvable:$true] %s2613_s16 }
 0x53d   : > { %v2012_v41 = vadd.f32 %v2010_v32, %v2008_v53  ;;  %s4515_s4 = sld [smem:[#allocation11 + $0x2]]  ;;  %v2470_v53 = vstv %s4499_s27 }
 0x53e   : > { %s4518_s19 = sld [smem:[#allocation11 + $0x3]]  ;;  %v2498_v54 = vstv %s4501_s26 }
 0x53f   : > { %v2014_v42 = vmax.f32 %v2012_v41, 0.0  ;;  %v2091_v48 = vpop.f32.mrf.mxu3  ;;  %v2526_v41 = vstv %s4503_s29 }
 0x540   : > { %v2121_v17 = vadd.f32 %v2120_v13, %v2091_v48 }
 0x541   : > { %v2460_v62 = vmul.f32 %v2458_v39, %v2014_v42  ;;  %v2488_v35 = vmul.f32 %v2486_v47, %v2014_v42  ;;  %v2516_v55 = vmul.f32 %v2514_v3, %v2014_v42  ;;  %v2544_v56 = vmul.f32 %v2542_v2, %v2014_v42  ;;  %v2123_v57 = vpop.f32.mrf.mxu1 }
 0x542   : > { %v2464_v47 = vstv %s4488_s28  ;;  %v2492_v3 = vstv %s4490_s20  ;;  %v2520_v2 = vstv %s4493_s30  ;;  %v2554_v42 = vstv %s4505_s17  ;;  %s4641_s28 = sshll.u32 %s3587_s25, 6  ;;  %s2596_s25 = scalar_lea.sflag [#allocation3], %s4124_s5 }
 0x543   : > { %v4478_v63 = vadd.f32 %v2460_v62, %v2456_v31  ;;  %v4480_v0 = vadd.f32 %v2488_v35, %v2484_v36  ;;  %v4482_v15 = vadd.f32 %v2516_v55, %v2512_v60  ;;  %v4484_v8 = vadd.f32 %v2544_v56, %v2540_v58  ;;  %s2612_s8 = scalar_lea.hbm %s4612_s11, %s4641_s28 }
 0x544   : > { %v2476_v55 = vstv %s4507_s0  ;;  %s2615_s27 = sshll.u32 %s2612_s8, 4  ;;  %s2616_s27 = int_to_ptr.hbm [resolvable:$true] %s2615_s27 }
 0x545   : > { %s3423_s26 = sshra.s32 %s2616_s27, 4  ;;  %s3424_s26 = int_to_ptr.hbm [resolvable:$true] %s3423_s26 }
 0x546   : > { %s3425_s29 = scalar_lea.hbm %s3424_s26, 64  ;;  %p3430_p12 = scmp.lt.s32.totalorder %s3424_s26, %s4612_s11 }
 0x547   : > { %v2094_v18 = vpop.f32.mrf.mxu3  ;;  %p3426_p9 = scmp.ne.s32.totalorder %s3424_s26, %s3425_s29 }
 0x548   : > { %v2124_v32 = vadd.f32 %v2123_v57, %v2094_v18 }
 0x549   : > { %v2186_v22 = vpop.f32.mrf.mxu1  ;;  %p3427_p10 = pnand %p3426_p9, %p3604_p5 }
 0x54b   : > { %p3428_p11 = pneg %p3427_p10 }
 0x54f   : > { %v2152_v20 = vpop.f32.mrf.mxu3 }
 0x550   : > { %v2158_v43 = vadd.f32 %v2152_v20, %v2121_v17 }
 0x551   : > { %v2189_v23 = vpop.f32.mrf.mxu1 }
 0x552   : > { %v2192_v27 = vadd.f32 %v2186_v22, %v2158_v43 }
 0x557   : > { %v2155_v25 = vpop.f32.mrf.mxu3 }
 0x558   : > { %v2159_v30 = vadd.f32 %v2155_v25, %v2124_v32  ;;  %v2504_v25 = vstv %s4512_s1  ;;  %s3429_s1 = scalar_lea.hbm %s4612_s11, 128 }
 0x559   : > { %v2310_v26 = vpop.f32.mrf.mxu1  ;;  %p3431_p13 = scmp.lt.s32.totalorder %s3429_s1, %s3425_s29 }
 0x55a   : > { %v2193_v37 = vadd.f32 %v2189_v23, %v2159_v30 }
 0x55b   : > { %p3432_p0 = por %p3431_p13, %p3430_p12 }
 0x55d   : > { %p3433_p1 = pnand %p3432_p0, %p3428_p11 }
 0x55f   : > { %v2220_v28 = vpop.f32.mrf.mxu3 }
 0x560   : > { %v2226_v33 = vadd.f32 %v2220_v28, %v2192_v27 }
 0x561   : > { %v2313_v14 = vpop.f32.mrf.mxu1 }
 0x562   : > { %v2230_v24 = vadd.f32 %v2229_v34, %v2226_v33 }
 0x564   : > { %v2232_v59 = vmax.f32 %v2230_v24, 0.0 }
 0x566   : > { %v2465_v11 = vmul.f32 %v2464_v47, %v2232_v59  ;;  %v2493_v12 = vmul.f32 %v2492_v3, %v2232_v59  ;;  %v2521_v4 = vmul.f32 %v2520_v2, %v2232_v59  ;;  %v2549_v49 = vmul.f32 %v2548_v7, %v2232_v59 }
 0x567   : > { %v2223_v38 = vpop.f32.mrf.mxu3 }
 0x568   : > { %v2227_v5 = vadd.f32 %v2223_v38, %v2193_v37  ;;  %v2467_v48 = vadd.f32 %v2465_v11, %v4470_v51  ;;  %v2495_v31 = vadd.f32 %v2493_v12, %v4472_v61  ;;  %v2523_v36 = vadd.f32 %v2521_v4, %v4474_v46  ;;  %v3284_v4 = vld [vmem:[%s3685_s15 + $0x10] sm:$0xff] }
 0x569   : > { %v2371_v16 = vpop.f32.mrf.mxu1  ;;  %v2551_v58 = vadd.f32 %v2549_v49, %v4476_v1  ;;  %v2560_v51 = vstv %s4518_s19 }
 0x56a   : > { %v2231_v19 = vadd.f32 %v2229_v34, %v2227_v5 }
 0x56c   : > { %v2233_v62 = vmax.f32 %v2231_v19, 0.0  ;;  %v3285_v19 = vld [vmem:[%s3685_s15 + $0x20] sm:$0xff] }
 0x56e   : > { %v2494_v17 = vmul.f32 %v2492_v3, %v2233_v62  ;;  %v2550_v34 = vmul.f32 %v2548_v7, %v2233_v62 }
 0x56f   : > { %v2339_v21 = vpop.f32.mrf.mxu3 }
 0x570   : > { %v2340_v44 = vadd.f32 %v2339_v21, %v2310_v26  ;;  %v2532_v26 = vstv %s4515_s4  ;;  %v2522_v21 = vmul.f32 %v2520_v2, %v2233_v62  ;;  %v2496_v24 = vadd.f32 %v2494_v17, %v4480_v0  ;;  %v3283_v0 = vld [vmem:[%s3685_s15] sm:$0xff] }
 0x571   : > { %v2374_v52 = vpop.f32.mrf.mxu1 }
 0x572   : > { %v2377_v45 = vadd.f32 %v2371_v16, %v2340_v44  ;;  %v2466_v16 = vmul.f32 %v2464_v47, %v2233_v62  ;;  %v2524_v44 = vadd.f32 %v2522_v21, %v4482_v15  ;;  %v3289_v62 = vld [vmem:[%s3685_s15 + $0x28] sm:$0xff] }
 0x574   : > { %v2468_v30 = vadd.f32 %v2466_v16, %v4478_v63 }
 0x577   : > { %v2342_v40 = vpop.f32.mrf.mxu3 }
 0x578   : > { %v2343_v50 = vadd.f32 %v2342_v40, %v2313_v14 }
 0x579   : > { %v2439_v39 = vpop.f32.mrf.mxu1 }
 0x57a   : > { %v2378_v35 = vadd.f32 %v2374_v52, %v2343_v50 }
 0x57f   : > { %v2405_v6 = vpop.f32.mrf.mxu3 }
 0x580   : > { %v2411_v9 = vadd.f32 %v2405_v6, %v2377_v45 }
 0x581   : > { %v2442_v23 = vpop.f32.mrf.mxu1 }
 0x582   : > { %v2445_v29 = vadd.f32 %v2439_v39, %v2411_v9  ;;  %v2552_v39 = vadd.f32 %v2550_v34, %v4484_v8 }
 0x584   : > { %v2449_v13 = vadd.f32 %v2448_v10, %v2445_v29 }
 0x586   : > { %v2451_v60 = vmax.f32 %v2449_v13, 0.0  ;;  %v3286_v13 = vld [vmem:[%s3685_s15 + $0x30] sm:$0xff] }
 0x587   : > { %v2408_v56 = vpop.f32.mrf.mxu3 }
 0x588   : > { %v2471_v57 = vmul.f32 %v2470_v53, %v2451_v60  ;;  %v2499_v18 = vmul.f32 %v2498_v54, %v2451_v60  ;;  %v2527_v22 = vmul.f32 %v2526_v41, %v2451_v60  ;;  %v2555_v20 = vmul.f32 %v2554_v42, %v2451_v60 }
 0x589   : > { %v2412_v28 = vadd.f32 %v2408_v56, %v2378_v35 }
 0x58a   : > { %v2473_v14 = vadd.f32 %v2471_v57, %v2467_v48  ;;  %v2501_v61 = vadd.f32 %v2499_v18, %v2495_v31  ;;  %v2529_v38 = vadd.f32 %v2527_v22, %v2523_v36  ;;  %v2557_v46 = vadd.f32 %v2555_v20, %v2551_v58  ;;  %v3288_v36 = vld [vmem:[%s3685_s15 + $0x18] sm:$0xff] }
 0x58b   : > { %v2446_v1 = vadd.f32 %v2442_v23, %v2412_v28 }
 0x58c   : > { %v2477_v43 = vadd.f32 %v2476_v55, %v2473_v14  ;;  %v2505_v27 = vadd.f32 %v2504_v25, %v2501_v61  ;;  %v2533_v33 = vadd.f32 %v2532_v26, %v2529_v38  ;;  %v2561_v52 = vadd.f32 %v2560_v51, %v2557_v46 }
 0x58d   : > { %v2450_v32 = vadd.f32 %v2448_v10, %v2446_v1 }
 0x58e   : > { %3263 = vtanh.f32 %v2477_v43 }
 0x58f   : > { %3265 = vtanh.f32 %v2505_v27  ;;  %v2452_v40 = vmax.f32 %v2450_v32, 0.0 }
 0x590   : > { %3267 = vtanh.f32 %v2533_v33 }
 0x591   : > { %3269 = vtanh.f32 %v2561_v52  ;;  %v2472_v37 = vmul.f32 %v2470_v53, %v2452_v40  ;;  %v2500_v59 = vmul.f32 %v2498_v54, %v2452_v40  ;;  %v2528_v45 = vmul.f32 %v2526_v41, %v2452_v40 }
 0x592   : > { %v2556_v47 = vmul.f32 %v2554_v42, %v2452_v40  ;;  %v3287_v42 = vld [vmem:[%s3685_s15 + $0x8] sm:$0xff] }
 0x593   : > { %v2474_v3 = vadd.f32 %v2472_v37, %v2468_v30  ;;  %v2502_v2 = vadd.f32 %v2500_v59, %v2496_v24  ;;  %v2530_v5 = vadd.f32 %v2528_v45, %v2524_v44 }
 0x594   : > { %v3264_v63 = vpop.eup %3263  ;;  %v2558_v6 = vadd.f32 %v2556_v47, %v2552_v39 }
 0x595   : > { %v3266_v7 = vpop.eup %3265  ;;  %v2567_v15 = vadd.f32 %v3283_v0, %v3264_v63  ;;  %v2478_v9 = vadd.f32 %v2476_v55, %v2474_v3  ;;  %v2506_v10 = vadd.f32 %v2504_v25, %v2502_v2  ;;  %v2534_v11 = vadd.f32 %v2532_v26, %v2530_v5  ;;  %v3290_v55 = vld [vmem:[%s3685_s15 + $0x38] sm:$0xff] }
 0x596   : > { %v3268_v12 = vpop.eup %3267  ;;  %v2574_v29 = vadd.f32 %v3284_v4, %v3266_v7  ;;  %v2562_v8 = vadd.f32 %v2560_v51, %v2558_v6 }
 0x597   : > { %v3270_v49 = vpop.eup %3269  ;;  %2569 = vst.msk [vmem:[%s4540_s2] sm:$0xff] %vm552_vm0, %v2567_v15  ;;  %v2582_v50 = vadd.f32 %v3285_v19, %v3268_v12  ;;  %3271 = vtanh.f32 %v2478_v9 }
 0x598   : > { %3114 = vst.msk [vmem:[%s4540_s2 + $0x10] sm:$0xff] %vm552_vm0, %v2574_v29  ;;  %v2590_v53 = vadd.f32 %v3286_v13, %v3270_v49  ;;  %3273 = vtanh.f32 %v2506_v10 }
 0x599   : > { %3118 = vst.msk [vmem:[%s4540_s2 + $0x20] sm:$0xff] %vm552_vm0, %v2582_v50  ;;  %3275 = vtanh.f32 %v2534_v11 }
 0x59a   : > { %3122 = vst.msk [vmem:[%s4540_s2 + $0x30] sm:$0xff] %vm552_vm0, %v2590_v53  ;;  %3277 = vtanh.f32 %v2562_v8 }
 0x59d   : > { %v3272_v54 = vpop.eup %3271 }
 0x59e   : > { %v3274_v41 = vpop.eup %3273  ;;  %v2568_v48 = vadd.f32 %v3287_v42, %v3272_v54 }
 0x59f   : > { %v3276_v31 = vpop.eup %3275  ;;  %v2575_v60 = vadd.f32 %v3288_v36, %v3274_v41 }
 0x5a0   : > { %v3278_v58 = vpop.eup %3277  ;;  %2570 = vst.msk [vmem:[%s4540_s2 + $0x8] sm:$0xff] %vm552_vm0, %v2568_v48  ;;  %v2583_v35 = vadd.f32 %v3289_v62, %v3276_v31 }
 0x5a1   : > { %3115 = vst.msk [vmem:[%s4540_s2 + $0x18] sm:$0xff] %vm552_vm0, %v2575_v60  ;;  %v2591_v56 = vadd.f32 %v3290_v55, %v3278_v58 }
 0x5a2   : > { %3119 = vst.msk [vmem:[%s4540_s2 + $0x28] sm:$0xff] %vm552_vm0, %v2583_v35 }
 0x5a3   : > { %3123 = vst.msk [vmem:[%s4540_s2 + $0x38] sm:$0xff] %vm552_vm0, %v2591_v56 }
 0x5a4   : > { %3436 = shalt.err (!%p3433_p1)
}
 0x5a5   : > { %3164 = dma.vmem_to_hbm [thread:$0]  (%p3604_p5), %s2614_s16, 1024, %s2616_s27, %s2596_s25, %s3499_s6, %s3499_s6, %s3500_s18  }
 0x5a6 PF: > { %p3206_p2 = scmp.ge.s32.totalorder %s3491_s24, 2  ;;  %s2647_s5 = sand.u32 1, %s3479_s21  }
 0x5a7   : > { %s2648_s19 = scalar_lea.sflag [#allocation3], %s2647_s5 }
 0x5a8   : > { %p3188_p3 = pnand %p3206_p2, %p3608_p6 }
 0x5aa   : > { %p3189_p4 = pneg %p3188_p3 }
 0x5ac   : > { %3470 = dma.done.wait (%p3189_p4), %s2648_s19, 1024  }
 0x5ad   : > { %3472 = vsyncadd (%p3189_p4), %s2648_s19, 4294966272  ;;  %s2658_s23 = scalar_lea.sflag [#allocation15], %s2647_s5 }
 0x5ae   : > { %3474 = dma.done.wait (%p3189_p4), %s2658_s23, 1024  }
 0x5af   : > { %3476 = vsyncadd (%p3189_p4), %s2658_s23, 4294966272  ;;  %s4642_s24 = sld [smem:[#allocation23_spill]]  ;;  %s4645_s21 = smov %s3483_s22 }
 0x5b0   : > { %s4643_s13 = sld [smem:[#allocation22_spill]] }
 0x5b1   : > { %s4644_s23 = sld [smem:[#allocation24_spill]] }
 0x5b5   : > { %p30_p5 = scmp.ge.s32.totalorder %s4642_s24, 4  }
 0x5b6   : > { %s4646_s22 = smov %s4643_s13 }
 0x5b7   :  { %32 = sbr.rel (!%p30_p5) target bundleno = 17 (0x11), region = 194 }
 0x5bc   :  { %2664 = vsyncpa [#allocation3], 1 }
 0x5bd   :  { %2666 = vsyncpa [#allocation3 + $0x1], 1 }
 0x5be   :  { %2667 = vsyncpa [#allocation15], 1 }
 0x5bf   :  { %2669 = vsyncpa [#allocation15 + $0x1], 1 }
 0x5c0   :  { %2670 = vsyncpa [#allocation4], 1 }
 0x5c1   :  { %2672 = vsyncpa [#allocation4 + $0x1], 1 }
 0x5c2   :  { %2673 = vsyncpa [#allocation6], 1 }
 0x5c3   :  { %2674 = vsyncpa [#allocation9], 1 }
 0x5c4   :  { %2675 = vsyncpa [#allocation12], 1 }

</bundles_post_ra>
